<compile_context>
chip_gen: v7x
topology: tpu7x:2x2x1
jax: 0.10.0
libtpu: 0.0.40
codegen_flags: <defaults>
</compile_context>

<pallas_src>
from functools import partial

import jax
import jax.numpy as jnp
from jax import lax
from jax.experimental import pallas as pl
from jax.experimental.pallas import tpu as pltpu


# ----------------------------- config ---------------------------------------
class Config:
    l2_norm = True
    n_feature_dim = 32       # joint embedding dim (H)
    n_img_feature_dim = 64   # raw region feature dim
    word_dim = 32            # word embedding dim
    vocab_size = 50


LANE = 128  # lane-dense output width


# ----------------------------- Pallas kernel ---------------------------------
def _l2norm(x):
    # x * rsqrt(sum(x^2)): rsqrt runs on the EUP slot instead of a VPU divide.
    ss = jnp.sum(x * x, axis=-1, keepdims=True)
    return x * lax.rsqrt(jnp.maximum(ss, 1e-24))


def _fused_kernel(img_x_ref, img_w_ref, img_b_ref,
                  txt_x_ref, w_i_ref, b_i_ref, w_h_ref, b_hn_ref, len_ref,
                  img_o_ref, txt_o_ref,
                  *, l2_norm, n_words, n_sents, hidden):
    # ---------------- image encoder: Linear (+ l2norm) -----------------------
    # img_w is pre-padded to LANE output columns so the store is a full-width
    # vst; padded columns are zero and do not perturb the norm.
    y = jnp.dot(img_x_ref[...], img_w_ref[...],
                preferred_element_type=jnp.float32) + img_b_ref[...]
    if l2_norm:
        y = _l2norm(y)
    img_o_ref[...] = y.astype(img_o_ref.dtype)

    # ---------------- text encoder: fused-gate GRU ---------------------------
    H = hidden
    # Hoisted input projection: one [W*N, Dw] x [Dw, 3H] matmul instead of
    # three per timestep; input biases for r/z/n are folded in here.
    xp = jnp.dot(txt_x_ref[...], w_i_ref[...],
                 preferred_element_type=jnp.float32) + b_i_ref[...]  # [W*N,3H]

    w_h = w_h_ref[...]                                          # [H, 3H] bf16
    b_hn = jnp.broadcast_to(b_hn_ref[...], (n_sents, H))        # hoisted
    lens = jnp.broadcast_to(len_ref[...], (n_sents, H))         # hoisted

    h = jnp.zeros((n_sents, H), jnp.float32)
    acc = jnp.zeros((n_sents, H), jnp.float32)

    # Short static trip count (W=8): fully unrolled so the single h@W_h matmul,
    # the VPU gate math and the mask compares interleave across timesteps.
    for t in range(n_words):
        xp_t = xp[t * n_sents:(t + 1) * n_sents, :]             # static slice
        hp = jnp.dot(h.astype(jnp.bfloat16), w_h,
                     preferred_element_type=jnp.float32)        # [N, 3H]
        r = jax.nn.sigmoid(xp_t[:, 0:H] + hp[:, 0:H])
        z = jax.nn.sigmoid(xp_t[:, H:2 * H] + hp[:, H:2 * H])
        n = jnp.tanh(xp_t[:, 2 * H:3 * H] + r * (hp[:, 2 * H:3 * H] + b_hn))
        h_new = (1.0 - z) * n + z * h
        m_t = (lens > jnp.float32(t)).astype(jnp.float32)       # prefix mask
        h = m_t * h_new + (1.0 - m_t) * h                       # freeze padding
        acc = acc + m_t * h_new                                 # masked sum

    feat = acc / jnp.maximum(lens, 1.0)                         # masked mean
    if l2_norm:
        feat = _l2norm(feat)

    # Lane-dense writeback: zero the full LANE-wide block, then place the H
    # valid columns; the HBM writeback DMA is full-width (128 lanes).
    txt_o_ref[...] = jnp.zeros(txt_o_ref.shape, txt_o_ref.dtype)
    txt_o_ref[:, 0:H] = feat.astype(txt_o_ref.dtype)


# ----------------------------- model wrapper ---------------------------------
def forward(cfg, params, sent_inds, sent_msks, region_feats):
    B, R, D_img = region_feats.shape
    _, Tn, W = sent_inds.shape
    D = cfg.n_feature_dim
    Dw = cfg.word_dim
    Ni = B * R
    N = B * Tn
    pad = ((D + LANE - 1) // LANE) * LANE

    # ---- image branch inputs (bf16 matmul operands, f32 accumulation) -------
    img_x = region_feats.reshape(Ni, D_img).astype(jnp.bfloat16)
    img_w = jnp.zeros((D_img, pad), jnp.bfloat16).at[:, :D].set(
        params["img_w"].astype(jnp.bfloat16))
    img_b = jnp.zeros((1, pad), jnp.float32).at[:, :D].set(
        params["img_b"].reshape(1, D))

    # ---- text branch inputs --------------------------------------------------
    # Embedding gather is glue (XLA); heavy math runs inside the kernel.
    inds = sent_inds.reshape(N, W)
    emb = jnp.take(params["embedding"], inds, axis=0)            # [N, W, Dw]
    txt_x = jnp.transpose(emb, (1, 0, 2)).reshape(W * N, Dw)     # time-major
    txt_x = txt_x.astype(jnp.bfloat16)
    # per-sentence valid-word counts (prefix masks -> lengths)
    lengths = jnp.sum(sent_msks.reshape(N, W).astype(jnp.float32),
                      axis=-1, keepdims=True)                    # [N, 1]

    # Fused GRU gate weights: 2 MXU pushes per timestep instead of 6.
    w_i = jnp.concatenate([params["w_ir"], params["w_iz"], params["w_in"]],
                          axis=1).astype(jnp.bfloat16)           # [Dw, 3H]
    b_i = jnp.concatenate([params["b_r"], params["b_z"], params["b_in"]],
                          axis=1)                                # [1, 3H]
    w_h = jnp.concatenate([params["w_hr"], params["w_hz"], params["w_hn"]],
                          axis=1).astype(jnp.bfloat16)           # [H, 3H]

    def full(shape):
        nd = len(shape)
        return pl.BlockSpec(shape, lambda i, nd=nd: (0,) * nd)

    img_pad, txt_pad = pl.pallas_call(
        partial(_fused_kernel, l2_norm=cfg.l2_norm,
                n_words=W, n_sents=N, hidden=D),
        out_shape=(jax.ShapeDtypeStruct((Ni, pad), jnp.float32),
                   jax.ShapeDtypeStruct((N, pad), jnp.float32)),
        grid=(1,),   # toy sizes: whole problem is VMEM-resident in one block
        in_specs=[
            full((Ni, D_img)), full((D_img, pad)), full((1, pad)),
            full((W * N, Dw)), full((Dw, 3 * D)), full((1, 3 * D)),
            full((D, 3 * D)), full((1, D)), full((N, 1)),
        ],
        out_specs=(full((Ni, pad)), full((N, pad))),
        compiler_params=pltpu.CompilerParams(
            dimension_semantics=("arbitrary",)),
    )(img_x, img_w, img_b, txt_x, w_i, b_i, w_h, params["b_hn"], lengths)

    img_feats = img_pad[:, :D].reshape(B, R, D)
    lang_feats = txt_pad[:, :D].reshape(B, Tn, D)
    return img_feats, lang_feats


# ----------------------------- parameter init --------------------------------
def xavier_uniform(key, shape):
    fan_in, fan_out = shape[0], shape[1]
    a = (6.0 / (fan_in + fan_out)) ** 0.5
    return jax.random.uniform(key, shape, jnp.float32, -a, a)


def init_params(cfg, key):
    ks = jax.random.split(key, 8)
    D, Dimg, Dw, V = (cfg.n_feature_dim, cfg.n_img_feature_dim,
                      cfg.word_dim, cfg.vocab_size)
    zeros_b = jnp.zeros((1, D), jnp.float32)   # all biases init to 0.0
    return {
        "img_w": xavier_uniform(ks[0], (Dimg, D)),
        "img_b": jnp.zeros((D,), jnp.float32),
        "embedding": xavier_uniform(ks[1], (V, Dw)),
        "w_ir": xavier_uniform(ks[2], (Dw, D)),
        "w_iz": xavier_uniform(ks[3], (Dw, D)),
        "w_in": xavier_uniform(ks[4], (Dw, D)),
        "w_hr": xavier_uniform(ks[5], (D, D)),
        "w_hz": xavier_uniform(ks[6], (D, D)),
        "w_hn": xavier_uniform(ks[7], (D, D)),
        "b_r": zeros_b, "b_z": zeros_b, "b_in": zeros_b, "b_hn": zeros_b,
    }


# ----------------------------- main ------------------------------------------
if __name__ == "__main__":
    cfg = Config()
    key = jax.random.PRNGKey(0)
    k_inds, k_len, k_reg, k_par = jax.random.split(key, 4)

    B, Tn, W, R = 2, 2, 8, 8
    sent_inds = jax.random.randint(k_inds, (B, Tn, W), 0, cfg.vocab_size,
                                   dtype=jnp.int32)
    lengths = jax.random.randint(k_len, (B, Tn), 3, W + 1)
    sent_msks = (jnp.arange(W)[None, None, :] < lengths[:, :, None]).astype(
        jnp.float32)
    region_feats = jax.random.normal(k_reg, (B, R, cfg.n_img_feature_dim),
                                     jnp.float32)

    params = init_params(cfg, k_par)

    img_feats, lang_feats = forward(cfg, params, sent_inds, sent_msks,
                                    region_feats)
    jax.block_until_ready((img_feats, lang_feats))

    assert img_feats.shape == (B, R, cfg.n_feature_dim)
    assert lang_feats.shape == (B, Tn, cfg.n_feature_dim)
    # l2_norm sanity: per-vector norms ~ 1
    assert jnp.allclose(jnp.linalg.norm(img_feats, axis=-1), 1.0, atol=1e-3)
    assert jnp.allclose(jnp.linalg.norm(lang_feats, axis=-1), 1.0, atol=1e-3)
    print("KERNEL_OK")
</pallas_src>

<mosaic_0001>
module attributes {stable_mosaic.version = 11 : i64} {
  func.func @_fused_kernel(%arg0: i32, %arg1: memref<16x64xbf16, #tpu.memory_space<vmem>>, %arg2: memref<64x128xbf16, #tpu.memory_space<vmem>>, %arg3: memref<1x128xf32, #tpu.memory_space<vmem>>, %arg4: memref<32x32xbf16, #tpu.memory_space<vmem>>, %arg5: memref<32x96xbf16, #tpu.memory_space<vmem>>, %arg6: memref<1x96xf32, #tpu.memory_space<vmem>>, %arg7: memref<32x96xbf16, #tpu.memory_space<vmem>>, %arg8: memref<1x32xf32, #tpu.memory_space<vmem>>, %arg9: memref<4x1xf32, #tpu.memory_space<vmem>>, %arg10: memref<16x128xf32, #tpu.memory_space<vmem>>, %arg11: memref<4x128xf32, #tpu.memory_space<vmem>>) attributes {dimension_semantics = [#tpu.dimension_semantics<arbitrary>], iteration_bounds = array<i64: 1>, scalar_prefetch = 0 : i64, scratch_operands = 0 : i64, tpu.core_type = #tpu.core_type<tc>, window_params = [{pipeline_mode = #tpu.pipeline_mode<synchronous>, transform_indices = @transform_0, window_bounds = array<i64: 16, 64>}, {pipeline_mode = #tpu.pipeline_mode<synchronous>, transform_indices = @transform_1, window_bounds = array<i64: 64, 128>}, {pipeline_mode = #tpu.pipeline_mode<synchronous>, transform_indices = @transform_2, window_bounds = array<i64: 1, 128>}, {pipeline_mode = #tpu.pipeline_mode<synchronous>, transform_indices = @transform_3, window_bounds = array<i64: 32, 32>}, {pipeline_mode = #tpu.pipeline_mode<synchronous>, transform_indices = @transform_4, window_bounds = array<i64: 32, 96>}, {pipeline_mode = #tpu.pipeline_mode<synchronous>, transform_indices = @transform_5, window_bounds = array<i64: 1, 96>}, {pipeline_mode = #tpu.pipeline_mode<synchronous>, transform_indices = @transform_6, window_bounds = array<i64: 32, 96>}, {pipeline_mode = #tpu.pipeline_mode<synchronous>, transform_indices = @transform_7, window_bounds = array<i64: 1, 32>}, {pipeline_mode = #tpu.pipeline_mode<synchronous>, transform_indices = @transform_8, window_bounds = array<i64: 4, 1>}, {pipeline_mode = #tpu.pipeline_mode<synchronous>, transform_indices = @transform_9, window_bounds = array<i64: 16, 128>}, {pipeline_mode = #tpu.pipeline_mode<synchronous>, transform_indices = @transform_10, window_bounds = array<i64: 4, 128>}]} {
    %c0 = arith.constant 0 : index
    %c0_0 = arith.constant 0 : index
    %0 = vector.load %arg1[%c0, %c0_0] : memref<16x64xbf16, #tpu.memory_space<vmem>>, vector<16x64xbf16>
    %c0_1 = arith.constant 0 : index
    %c0_2 = arith.constant 0 : index
    %1 = vector.load %arg2[%c0_1, %c0_2] : memref<64x128xbf16, #tpu.memory_space<vmem>>, vector<64x128xbf16>
    %cst = arith.constant dense<0.000000e+00> : vector<16x128xf32>
    %2 = tpu.matmul %0, %1, %cst {dimension_numbers = #tpu.dot_dimension_numbers<[1], [0], [0], [1], [0, 0, 1, 1], [], []>} : vector<16x64xbf16>, vector<64x128xbf16>, vector<16x128xf32> -> vector<16x128xf32>
    %c0_3 = arith.constant 0 : index
    %c0_4 = arith.constant 0 : index
    %3 = vector.load %arg3[%c0_3, %c0_4] : memref<1x128xf32, #tpu.memory_space<vmem>>, vector<1x128xf32>
    %4 = vector.broadcast %3 : vector<1x128xf32> to vector<16x128xf32>
    %5 = arith.addf %2, %4 : vector<16x128xf32>
    %6 = arith.mulf %5, %5 : vector<16x128xf32>
    %cst_5 = arith.constant dense<0.000000e+00> : vector<16xf32>
    %7 = vector.multi_reduction <add>, %6, %cst_5 [1] : vector<16x128xf32> to vector<16xf32>
    %8 = vector.shape_cast %7 : vector<16xf32> to vector<16x1xf32>
    %cst_6 = arith.constant 1.000000e-24 : f32
    %9 = vector.broadcast %cst_6 : f32 to vector<16x1xf32>
    %10 = arith.maximumf %8, %9 : vector<16x1xf32>
    %11 = math.rsqrt %10 : vector<16x1xf32>
    %12 = vector.broadcast %11 : vector<16x1xf32> to vector<16x128xf32>
    %13 = arith.mulf %5, %12 : vector<16x128xf32>
    %c0_7 = arith.constant 0 : index
    %c0_8 = arith.constant 0 : index
    %14 = vector.load %arg10[%c0_7, %c0_8] : memref<16x128xf32, #tpu.memory_space<vmem>>, vector<16x128xf32>
    tpu.vector_store %arg10[%c0_7, %c0_8], %13 {strides = array<i32>} : memref<16x128xf32, #tpu.memory_space<vmem>>, vector<16x128xf32>,
    %c0_9 = arith.constant 0 : index
    %c0_10 = arith.constant 0 : index
    %15 = vector.load %arg4[%c0_9, %c0_10] : memref<32x32xbf16, #tpu.memory_space<vmem>>, vector<32x32xbf16>
    %c0_11 = arith.constant 0 : index
    %c0_12 = arith.constant 0 : index
    %16 = vector.load %arg5[%c0_11, %c0_12] : memref<32x96xbf16, #tpu.memory_space<vmem>>, vector<32x96xbf16>
    %cst_13 = arith.constant dense<0.000000e+00> : vector<32x96xf32>
    %17 = tpu.matmul %15, %16, %cst_13 {dimension_numbers = #tpu.dot_dimension_numbers<[1], [0], [0], [1], [0, 0, 1, 1], [], []>} : vector<32x32xbf16>, vector<32x96xbf16>, vector<32x96xf32> -> vector<32x96xf32>
    %c0_14 = arith.constant 0 : index
    %c0_15 = arith.constant 0 : index
    %18 = vector.load %arg6[%c0_14, %c0_15] : memref<1x96xf32, #tpu.memory_space<vmem>>, vector<1x96xf32>
    %19 = vector.broadcast %18 : vector<1x96xf32> to vector<32x96xf32>
    %20 = arith.addf %17, %19 : vector<32x96xf32>
    %c0_16 = arith.constant 0 : index
    %c0_17 = arith.constant 0 : index
    %21 = vector.load %arg7[%c0_16, %c0_17] : memref<32x96xbf16, #tpu.memory_space<vmem>>, vector<32x96xbf16>
    %c0_18 = arith.constant 0 : index
    %c0_19 = arith.constant 0 : index
    %22 = vector.load %arg8[%c0_18, %c0_19] : memref<1x32xf32, #tpu.memory_space<vmem>>, vector<1x32xf32>
    %23 = vector.shape_cast %22 : vector<1x32xf32> to vector<1x32xf32>
    %24 = vector.broadcast %23 : vector<1x32xf32> to vector<4x32xf32>
    %c0_20 = arith.constant 0 : index
    %c0_21 = arith.constant 0 : index
    %25 = vector.load %arg9[%c0_20, %c0_21] : memref<4x1xf32, #tpu.memory_space<vmem>>, vector<4x1xf32>
    %26 = vector.shape_cast %25 : vector<4x1xf32> to vector<4x1xf32>
    %27 = vector.broadcast %26 : vector<4x1xf32> to vector<4x32xf32>
    %cst_22 = arith.constant 0.000000e+00 : f32
    %28 = vector.broadcast %cst_22 : f32 to vector<4x32xf32>
    %cst_23 = arith.constant 0.000000e+00 : f32
    %29 = vector.broadcast %cst_23 : f32 to vector<4x32xf32>
    %30 = vector.extract_strided_slice %20 {offsets = [0, 0], sizes = [4, 96], strides = [1, 1]} : vector<32x96xf32> to vector<4x96xf32>
    %31 = arith.truncf %28 : vector<4x32xf32> to vector<4x32xbf16>
    %cst_24 = arith.constant dense<0.000000e+00> : vector<4x96xf32>
    %32 = tpu.matmul %31, %21, %cst_24 {dimension_numbers = #tpu.dot_dimension_numbers<[1], [0], [0], [1], [0, 0, 1, 1], [], []>} : vector<4x32xbf16>, vector<32x96xbf16>, vector<4x96xf32> -> vector<4x96xf32>
    %33 = vector.extract_strided_slice %30 {offsets = [0, 0], sizes = [4, 32], strides = [1, 1]} : vector<4x96xf32> to vector<4x32xf32>
    %34 = vector.extract_strided_slice %32 {offsets = [0, 0], sizes = [4, 32], strides = [1, 1]} : vector<4x96xf32> to vector<4x32xf32>
    %35 = arith.addf %33, %34 : vector<4x32xf32>
    %36 = arith.negf %35 : vector<4x32xf32>
    %37 = math.exp %36 : vector<4x32xf32>
    %cst_25 = arith.constant 1.000000e+00 : f32
    %38 = vector.broadcast %cst_25 : f32 to vector<4x32xf32>
    %39 = arith.addf %38, %37 : vector<4x32xf32>
    %40 = arith.divf %38, %39 : vector<4x32xf32>
    %41 = vector.extract_strided_slice %30 {offsets = [0, 32], sizes = [4, 32], strides = [1, 1]} : vector<4x96xf32> to vector<4x32xf32>
    %42 = vector.extract_strided_slice %32 {offsets = [0, 32], sizes = [4, 32], strides = [1, 1]} : vector<4x96xf32> to vector<4x32xf32>
    %43 = arith.addf %41, %42 : vector<4x32xf32>
    %44 = arith.negf %43 : vector<4x32xf32>
    %45 = math.exp %44 : vector<4x32xf32>
    %cst_26 = arith.constant 1.000000e+00 : f32
    %46 = vector.broadcast %cst_26 : f32 to vector<4x32xf32>
    %47 = arith.addf %46, %45 : vector<4x32xf32>
    %48 = arith.divf %46, %47 : vector<4x32xf32>
    %49 = vector.extract_strided_slice %30 {offsets = [0, 64], sizes = [4, 32], strides = [1, 1]} : vector<4x96xf32> to vector<4x32xf32>
    %50 = vector.extract_strided_slice %32 {offsets = [0, 64], sizes = [4, 32], strides = [1, 1]} : vector<4x96xf32> to vector<4x32xf32>
    %51 = arith.addf %50, %24 : vector<4x32xf32>
    %52 = arith.mulf %40, %51 : vector<4x32xf32>
    %53 = arith.addf %49, %52 : vector<4x32xf32>
    %54 = math.tanh %53 : vector<4x32xf32>
    %cst_27 = arith.constant 1.000000e+00 : f32
    %55 = vector.broadcast %cst_27 : f32 to vector<4x32xf32>
    %56 = arith.subf %55, %48 : vector<4x32xf32>
    %57 = arith.mulf %56, %54 : vector<4x32xf32>
    %58 = arith.mulf %48, %28 : vector<4x32xf32>
    %59 = arith.addf %57, %58 : vector<4x32xf32>
    %cst_28 = arith.constant 0.000000e+00 : f32
    %60 = vector.broadcast %cst_28 : f32 to vector<4x32xf32>
    %61 = arith.cmpf ogt, %27, %60 : vector<4x32xf32>
    %62 = arith.extui %61 : vector<4x32xi1> to vector<4x32xi32>
    %63 = arith.sitofp %62 : vector<4x32xi32> to vector<4x32xf32>
    %64 = arith.mulf %63, %59 : vector<4x32xf32>
    %cst_29 = arith.constant 1.000000e+00 : f32
    %65 = vector.broadcast %cst_29 : f32 to vector<4x32xf32>
    %66 = arith.subf %65, %63 : vector<4x32xf32>
    %67 = arith.mulf %66, %28 : vector<4x32xf32>
    %68 = arith.addf %64, %67 : vector<4x32xf32>
    %69 = arith.mulf %63, %59 : vector<4x32xf32>
    %70 = arith.addf %29, %69 : vector<4x32xf32>
    %71 = vector.extract_strided_slice %20 {offsets = [4, 0], sizes = [4, 96], strides = [1, 1]} : vector<32x96xf32> to vector<4x96xf32>
    %72 = arith.truncf %68 : vector<4x32xf32> to vector<4x32xbf16>
    %cst_30 = arith.constant dense<0.000000e+00> : vector<4x96xf32>
    %73 = tpu.matmul %72, %21, %cst_30 {dimension_numbers = #tpu.dot_dimension_numbers<[1], [0], [0], [1], [0, 0, 1, 1], [], []>} : vector<4x32xbf16>, vector<32x96xbf16>, vector<4x96xf32> -> vector<4x96xf32>
    %74 = vector.extract_strided_slice %71 {offsets = [0, 0], sizes = [4, 32], strides = [1, 1]} : vector<4x96xf32> to vector<4x32xf32>
    %75 = vector.extract_strided_slice %73 {offsets = [0, 0], sizes = [4, 32], strides = [1, 1]} : vector<4x96xf32> to vector<4x32xf32>
    %76 = arith.addf %74, %75 : vector<4x32xf32>
    %77 = arith.negf %76 : vector<4x32xf32>
    %78 = math.exp %77 : vector<4x32xf32>
    %cst_31 = arith.constant 1.000000e+00 : f32
    %79 = vector.broadcast %cst_31 : f32 to vector<4x32xf32>
    %80 = arith.addf %79, %78 : vector<4x32xf32>
    %81 = arith.divf %79, %80 : vector<4x32xf32>
    %82 = vector.extract_strided_slice %71 {offsets = [0, 32], sizes = [4, 32], strides = [1, 1]} : vector<4x96xf32> to vector<4x32xf32>
    %83 = vector.extract_strided_slice %73 {offsets = [0, 32], sizes = [4, 32], strides = [1, 1]} : vector<4x96xf32> to vector<4x32xf32>
    %84 = arith.addf %82, %83 : vector<4x32xf32>
    %85 = arith.negf %84 : vector<4x32xf32>
    %86 = math.exp %85 : vector<4x32xf32>
    %cst_32 = arith.constant 1.000000e+00 : f32
    %87 = vector.broadcast %cst_32 : f32 to vector<4x32xf32>
    %88 = arith.addf %87, %86 : vector<4x32xf32>
    %89 = arith.divf %87, %88 : vector<4x32xf32>
    %90 = vector.extract_strided_slice %71 {offsets = [0, 64], sizes = [4, 32], strides = [1, 1]} : vector<4x96xf32> to vector<4x32xf32>
    %91 = vector.extract_strided_slice %73 {offsets = [0, 64], sizes = [4, 32], strides = [1, 1]} : vector<4x96xf32> to vector<4x32xf32>
    %92 = arith.addf %91, %24 : vector<4x32xf32>
    %93 = arith.mulf %81, %92 : vector<4x32xf32>
    %94 = arith.addf %90, %93 : vector<4x32xf32>
    %95 = math.tanh %94 : vector<4x32xf32>
    %cst_33 = arith.constant 1.000000e+00 : f32
    %96 = vector.broadcast %cst_33 : f32 to vector<4x32xf32>
    %97 = arith.subf %96, %89 : vector<4x32xf32>
    %98 = arith.mulf %97, %95 : vector<4x32xf32>
    %99 = arith.mulf %89, %68 : vector<4x32xf32>
    %100 = arith.addf %98, %99 : vector<4x32xf32>
    %cst_34 = arith.constant 1.000000e+00 : f32
    %101 = vector.broadcast %cst_34 : f32 to vector<4x32xf32>
    %102 = arith.cmpf ogt, %27, %101 : vector<4x32xf32>
    %103 = arith.extui %102 : vector<4x32xi1> to vector<4x32xi32>
    %104 = arith.sitofp %103 : vector<4x32xi32> to vector<4x32xf32>
    %105 = arith.mulf %104, %100 : vector<4x32xf32>
    %cst_35 = arith.constant 1.000000e+00 : f32
    %106 = vector.broadcast %cst_35 : f32 to vector<4x32xf32>
    %107 = arith.subf %106, %104 : vector<4x32xf32>
    %108 = arith.mulf %107, %68 : vector<4x32xf32>
    %109 = arith.addf %105, %108 : vector<4x32xf32>
    %110 = arith.mulf %104, %100 : vector<4x32xf32>
    %111 = arith.addf %70, %110 : vector<4x32xf32>
    %112 = vector.extract_strided_slice %20 {offsets = [8, 0], sizes = [4, 96], strides = [1, 1]} : vector<32x96xf32> to vector<4x96xf32>
    %113 = arith.truncf %109 : vector<4x32xf32> to vector<4x32xbf16>
    %cst_36 = arith.constant dense<0.000000e+00> : vector<4x96xf32>
    %114 = tpu.matmul %113, %21, %cst_36 {dimension_numbers = #tpu.dot_dimension_numbers<[1], [0], [0], [1], [0, 0, 1, 1], [], []>} : vector<4x32xbf16>, vector<32x96xbf16>, vector<4x96xf32> -> vector<4x96xf32>
    %115 = vector.extract_strided_slice %112 {offsets = [0, 0], sizes = [4, 32], strides = [1, 1]} : vector<4x96xf32> to vector<4x32xf32>
    %116 = vector.extract_strided_slice %114 {offsets = [0, 0], sizes = [4, 32], strides = [1, 1]} : vector<4x96xf32> to vector<4x32xf32>
    %117 = arith.addf %115, %116 : vector<4x32xf32>
    %118 = arith.negf %117 : vector<4x32xf32>
    %119 = math.exp %118 : vector<4x32xf32>
    %cst_37 = arith.constant 1.000000e+00 : f32
    %120 = vector.broadcast %cst_37 : f32 to vector<4x32xf32>
    %121 = arith.addf %120, %119 : vector<4x32xf32>
    %122 = arith.divf %120, %121 : vector<4x32xf32>
    %123 = vector.extract_strided_slice %112 {offsets = [0, 32], sizes = [4, 32], strides = [1, 1]} : vector<4x96xf32> to vector<4x32xf32>
    %124 = vector.extract_strided_slice %114 {offsets = [0, 32], sizes = [4, 32], strides = [1, 1]} : vector<4x96xf32> to vector<4x32xf32>
    %125 = arith.addf %123, %124 : vector<4x32xf32>
    %126 = arith.negf %125 : vector<4x32xf32>
    %127 = math.exp %126 : vector<4x32xf32>
    %cst_38 = arith.constant 1.000000e+00 : f32
    %128 = vector.broadcast %cst_38 : f32 to vector<4x32xf32>
    %129 = arith.addf %128, %127 : vector<4x32xf32>
    %130 = arith.divf %128, %129 : vector<4x32xf32>
    %131 = vector.extract_strided_slice %112 {offsets = [0, 64], sizes = [4, 32], strides = [1, 1]} : vector<4x96xf32> to vector<4x32xf32>
    %132 = vector.extract_strided_slice %114 {offsets = [0, 64], sizes = [4, 32], strides = [1, 1]} : vector<4x96xf32> to vector<4x32xf32>
    %133 = arith.addf %132, %24 : vector<4x32xf32>
    %134 = arith.mulf %122, %133 : vector<4x32xf32>
    %135 = arith.addf %131, %134 : vector<4x32xf32>
    %136 = math.tanh %135 : vector<4x32xf32>
    %cst_39 = arith.constant 1.000000e+00 : f32
    %137 = vector.broadcast %cst_39 : f32 to vector<4x32xf32>
    %138 = arith.subf %137, %130 : vector<4x32xf32>
    %139 = arith.mulf %138, %136 : vector<4x32xf32>
    %140 = arith.mulf %130, %109 : vector<4x32xf32>
    %141 = arith.addf %139, %140 : vector<4x32xf32>
    %cst_40 = arith.constant 2.000000e+00 : f32
    %142 = vector.broadcast %cst_40 : f32 to vector<4x32xf32>
    %143 = arith.cmpf ogt, %27, %142 : vector<4x32xf32>
    %144 = arith.extui %143 : vector<4x32xi1> to vector<4x32xi32>
    %145 = arith.sitofp %144 : vector<4x32xi32> to vector<4x32xf32>
    %146 = arith.mulf %145, %141 : vector<4x32xf32>
    %cst_41 = arith.constant 1.000000e+00 : f32
    %147 = vector.broadcast %cst_41 : f32 to vector<4x32xf32>
    %148 = arith.subf %147, %145 : vector<4x32xf32>
    %149 = arith.mulf %148, %109 : vector<4x32xf32>
    %150 = arith.addf %146, %149 : vector<4x32xf32>
    %151 = arith.mulf %145, %141 : vector<4x32xf32>
    %152 = arith.addf %111, %151 : vector<4x32xf32>
    %153 = vector.extract_strided_slice %20 {offsets = [12, 0], sizes = [4, 96], strides = [1, 1]} : vector<32x96xf32> to vector<4x96xf32>
    %154 = arith.truncf %150 : vector<4x32xf32> to vector<4x32xbf16>
    %cst_42 = arith.constant dense<0.000000e+00> : vector<4x96xf32>
    %155 = tpu.matmul %154, %21, %cst_42 {dimension_numbers = #tpu.dot_dimension_numbers<[1], [0], [0], [1], [0, 0, 1, 1], [], []>} : vector<4x32xbf16>, vector<32x96xbf16>, vector<4x96xf32> -> vector<4x96xf32>
    %156 = vector.extract_strided_slice %153 {offsets = [0, 0], sizes = [4, 32], strides = [1, 1]} : vector<4x96xf32> to vector<4x32xf32>
    %157 = vector.extract_strided_slice %155 {offsets = [0, 0], sizes = [4, 32], strides = [1, 1]} : vector<4x96xf32> to vector<4x32xf32>
    %158 = arith.addf %156, %157 : vector<4x32xf32>
    %159 = arith.negf %158 : vector<4x32xf32>
    %160 = math.exp %159 : vector<4x32xf32>
    %cst_43 = arith.constant 1.000000e+00 : f32
    %161 = vector.broadcast %cst_43 : f32 to vector<4x32xf32>
    %162 = arith.addf %161, %160 : vector<4x32xf32>
    %163 = arith.divf %161, %162 : vector<4x32xf32>
    %164 = vector.extract_strided_slice %153 {offsets = [0, 32], sizes = [4, 32], strides = [1, 1]} : vector<4x96xf32> to vector<4x32xf32>
    %165 = vector.extract_strided_slice %155 {offsets = [0, 32], sizes = [4, 32], strides = [1, 1]} : vector<4x96xf32> to vector<4x32xf32>
    %166 = arith.addf %164, %165 : vector<4x32xf32>
    %167 = arith.negf %166 : vector<4x32xf32>
    %168 = math.exp %167 : vector<4x32xf32>
    %cst_44 = arith.constant 1.000000e+00 : f32
    %169 = vector.broadcast %cst_44 : f32 to vector<4x32xf32>
    %170 = arith.addf %169, %168 : vector<4x32xf32>
    %171 = arith.divf %169, %170 : vector<4x32xf32>
    %172 = vector.extract_strided_slice %153 {offsets = [0, 64], sizes = [4, 32], strides = [1, 1]} : vector<4x96xf32> to vector<4x32xf32>
    %173 = vector.extract_strided_slice %155 {offsets = [0, 64], sizes = [4, 32], strides = [1, 1]} : vector<4x96xf32> to vector<4x32xf32>
    %174 = arith.addf %173, %24 : vector<4x32xf32>
    %175 = arith.mulf %163, %174 : vector<4x32xf32>
    %176 = arith.addf %172, %175 : vector<4x32xf32>
    %177 = math.tanh %176 : vector<4x32xf32>
    %cst_45 = arith.constant 1.000000e+00 : f32
    %178 = vector.broadcast %cst_45 : f32 to vector<4x32xf32>
    %179 = arith.subf %178, %171 : vector<4x32xf32>
    %180 = arith.mulf %179, %177 : vector<4x32xf32>
    %181 = arith.mulf %171, %150 : vector<4x32xf32>
    %182 = arith.addf %180, %181 : vector<4x32xf32>
    %cst_46 = arith.constant 3.000000e+00 : f32
    %183 = vector.broadcast %cst_46 : f32 to vector<4x32xf32>
    %184 = arith.cmpf ogt, %27, %183 : vector<4x32xf32>
    %185 = arith.extui %184 : vector<4x32xi1> to vector<4x32xi32>
    %186 = arith.sitofp %185 : vector<4x32xi32> to vector<4x32xf32>
    %187 = arith.mulf %186, %182 : vector<4x32xf32>
    %cst_47 = arith.constant 1.000000e+00 : f32
    %188 = vector.broadcast %cst_47 : f32 to vector<4x32xf32>
    %189 = arith.subf %188, %186 : vector<4x32xf32>
    %190 = arith.mulf %189, %150 : vector<4x32xf32>
    %191 = arith.addf %187, %190 : vector<4x32xf32>
    %192 = arith.mulf %186, %182 : vector<4x32xf32>
    %193 = arith.addf %152, %192 : vector<4x32xf32>
    %194 = vector.extract_strided_slice %20 {offsets = [16, 0], sizes = [4, 96], strides = [1, 1]} : vector<32x96xf32> to vector<4x96xf32>
    %195 = arith.truncf %191 : vector<4x32xf32> to vector<4x32xbf16>
    %cst_48 = arith.constant dense<0.000000e+00> : vector<4x96xf32>
    %196 = tpu.matmul %195, %21, %cst_48 {dimension_numbers = #tpu.dot_dimension_numbers<[1], [0], [0], [1], [0, 0, 1, 1], [], []>} : vector<4x32xbf16>, vector<32x96xbf16>, vector<4x96xf32> -> vector<4x96xf32>
    %197 = vector.extract_strided_slice %194 {offsets = [0, 0], sizes = [4, 32], strides = [1, 1]} : vector<4x96xf32> to vector<4x32xf32>
    %198 = vector.extract_strided_slice %196 {offsets = [0, 0], sizes = [4, 32], strides = [1, 1]} : vector<4x96xf32> to vector<4x32xf32>
    %199 = arith.addf %197, %198 : vector<4x32xf32>
    %200 = arith.negf %199 : vector<4x32xf32>
    %201 = math.exp %200 : vector<4x32xf32>
    %cst_49 = arith.constant 1.000000e+00 : f32
    %202 = vector.broadcast %cst_49 : f32 to vector<4x32xf32>
    %203 = arith.addf %202, %201 : vector<4x32xf32>
    %204 = arith.divf %202, %203 : vector<4x32xf32>
    %205 = vector.extract_strided_slice %194 {offsets = [0, 32], sizes = [4, 32], strides = [1, 1]} : vector<4x96xf32> to vector<4x32xf32>
    %206 = vector.extract_strided_slice %196 {offsets = [0, 32], sizes = [4, 32], strides = [1, 1]} : vector<4x96xf32> to vector<4x32xf32>
    %207 = arith.addf %205, %206 : vector<4x32xf32>
    %208 = arith.negf %207 : vector<4x32xf32>
    %209 = math.exp %208 : vector<4x32xf32>
    %cst_50 = arith.constant 1.000000e+00 : f32
    %210 = vector.broadcast %cst_50 : f32 to vector<4x32xf32>
    %211 = arith.addf %210, %209 : vector<4x32xf32>
    %212 = arith.divf %210, %211 : vector<4x32xf32>
    %213 = vector.extract_strided_slice %194 {offsets = [0, 64], sizes = [4, 32], strides = [1, 1]} : vector<4x96xf32> to vector<4x32xf32>
    %214 = vector.extract_strided_slice %196 {offsets = [0, 64], sizes = [4, 32], strides = [1, 1]} : vector<4x96xf32> to vector<4x32xf32>
    %215 = arith.addf %214, %24 : vector<4x32xf32>
    %216 = arith.mulf %204, %215 : vector<4x32xf32>
    %217 = arith.addf %213, %216 : vector<4x32xf32>
    %218 = math.tanh %217 : vector<4x32xf32>
    %cst_51 = arith.constant 1.000000e+00 : f32
    %219 = vector.broadcast %cst_51 : f32 to vector<4x32xf32>
    %220 = arith.subf %219, %212 : vector<4x32xf32>
    %221 = arith.mulf %220, %218 : vector<4x32xf32>
    %222 = arith.mulf %212, %191 : vector<4x32xf32>
    %223 = arith.addf %221, %222 : vector<4x32xf32>
    %cst_52 = arith.constant 4.000000e+00 : f32
    %224 = vector.broadcast %cst_52 : f32 to vector<4x32xf32>
    %225 = arith.cmpf ogt, %27, %224 : vector<4x32xf32>
    %226 = arith.extui %225 : vector<4x32xi1> to vector<4x32xi32>
    %227 = arith.sitofp %226 : vector<4x32xi32> to vector<4x32xf32>
    %228 = arith.mulf %227, %223 : vector<4x32xf32>
    %cst_53 = arith.constant 1.000000e+00 : f32
    %229 = vector.broadcast %cst_53 : f32 to vector<4x32xf32>
    %230 = arith.subf %229, %227 : vector<4x32xf32>
    %231 = arith.mulf %230, %191 : vector<4x32xf32>
    %232 = arith.addf %228, %231 : vector<4x32xf32>
    %233 = arith.mulf %227, %223 : vector<4x32xf32>
    %234 = arith.addf %193, %233 : vector<4x32xf32>
    %235 = vector.extract_strided_slice %20 {offsets = [20, 0], sizes = [4, 96], strides = [1, 1]} : vector<32x96xf32> to vector<4x96xf32>
    %236 = arith.truncf %232 : vector<4x32xf32> to vector<4x32xbf16>
    %cst_54 = arith.constant dense<0.000000e+00> : vector<4x96xf32>
    %237 = tpu.matmul %236, %21, %cst_54 {dimension_numbers = #tpu.dot_dimension_numbers<[1], [0], [0], [1], [0, 0, 1, 1], [], []>} : vector<4x32xbf16>, vector<32x96xbf16>, vector<4x96xf32> -> vector<4x96xf32>
    %238 = vector.extract_strided_slice %235 {offsets = [0, 0], sizes = [4, 32], strides = [1, 1]} : vector<4x96xf32> to vector<4x32xf32>
    %239 = vector.extract_strided_slice %237 {offsets = [0, 0], sizes = [4, 32], strides = [1, 1]} : vector<4x96xf32> to vector<4x32xf32>
    %240 = arith.addf %238, %239 : vector<4x32xf32>
    %241 = arith.negf %240 : vector<4x32xf32>
    %242 = math.exp %241 : vector<4x32xf32>
    %cst_55 = arith.constant 1.000000e+00 : f32
    %243 = vector.broadcast %cst_55 : f32 to vector<4x32xf32>
    %244 = arith.addf %243, %242 : vector<4x32xf32>
    %245 = arith.divf %243, %244 : vector<4x32xf32>
    %246 = vector.extract_strided_slice %235 {offsets = [0, 32], sizes = [4, 32], strides = [1, 1]} : vector<4x96xf32> to vector<4x32xf32>
    %247 = vector.extract_strided_slice %237 {offsets = [0, 32], sizes = [4, 32], strides = [1, 1]} : vector<4x96xf32> to vector<4x32xf32>
    %248 = arith.addf %246, %247 : vector<4x32xf32>
    %249 = arith.negf %248 : vector<4x32xf32>
    %250 = math.exp %249 : vector<4x32xf32>
    %cst_56 = arith.constant 1.000000e+00 : f32
    %251 = vector.broadcast %cst_56 : f32 to vector<4x32xf32>
    %252 = arith.addf %251, %250 : vector<4x32xf32>
    %253 = arith.divf %251, %252 : vector<4x32xf32>
    %254 = vector.extract_strided_slice %235 {offsets = [0, 64], sizes = [4, 32], strides = [1, 1]} : vector<4x96xf32> to vector<4x32xf32>
    %255 = vector.extract_strided_slice %237 {offsets = [0, 64], sizes = [4, 32], strides = [1, 1]} : vector<4x96xf32> to vector<4x32xf32>
    %256 = arith.addf %255, %24 : vector<4x32xf32>
    %257 = arith.mulf %245, %256 : vector<4x32xf32>
    %258 = arith.addf %254, %257 : vector<4x32xf32>
    %259 = math.tanh %258 : vector<4x32xf32>
    %cst_57 = arith.constant 1.000000e+00 : f32
    %260 = vector.broadcast %cst_57 : f32 to vector<4x32xf32>
    %261 = arith.subf %260, %253 : vector<4x32xf32>
    %262 = arith.mulf %261, %259 : vector<4x32xf32>
    %263 = arith.mulf %253, %232 : vector<4x32xf32>
    %264 = arith.addf %262, %263 : vector<4x32xf32>
    %cst_58 = arith.constant 5.000000e+00 : f32
    %265 = vector.broadcast %cst_58 : f32 to vector<4x32xf32>
    %266 = arith.cmpf ogt, %27, %265 : vector<4x32xf32>
    %267 = arith.extui %266 : vector<4x32xi1> to vector<4x32xi32>
    %268 = arith.sitofp %267 : vector<4x32xi32> to vector<4x32xf32>
    %269 = arith.mulf %268, %264 : vector<4x32xf32>
    %cst_59 = arith.constant 1.000000e+00 : f32
    %270 = vector.broadcast %cst_59 : f32 to vector<4x32xf32>
    %271 = arith.subf %270, %268 : vector<4x32xf32>
    %272 = arith.mulf %271, %232 : vector<4x32xf32>
    %273 = arith.addf %269, %272 : vector<4x32xf32>
    %274 = arith.mulf %268, %264 : vector<4x32xf32>
    %275 = arith.addf %234, %274 : vector<4x32xf32>
    %276 = vector.extract_strided_slice %20 {offsets = [24, 0], sizes = [4, 96], strides = [1, 1]} : vector<32x96xf32> to vector<4x96xf32>
    %277 = arith.truncf %273 : vector<4x32xf32> to vector<4x32xbf16>
    %cst_60 = arith.constant dense<0.000000e+00> : vector<4x96xf32>
    %278 = tpu.matmul %277, %21, %cst_60 {dimension_numbers = #tpu.dot_dimension_numbers<[1], [0], [0], [1], [0, 0, 1, 1], [], []>} : vector<4x32xbf16>, vector<32x96xbf16>, vector<4x96xf32> -> vector<4x96xf32>
    %279 = vector.extract_strided_slice %276 {offsets = [0, 0], sizes = [4, 32], strides = [1, 1]} : vector<4x96xf32> to vector<4x32xf32>
    %280 = vector.extract_strided_slice %278 {offsets = [0, 0], sizes = [4, 32], strides = [1, 1]} : vector<4x96xf32> to vector<4x32xf32>
    %281 = arith.addf %279, %280 : vector<4x32xf32>
    %282 = arith.negf %281 : vector<4x32xf32>
    %283 = math.exp %282 : vector<4x32xf32>
    %cst_61 = arith.constant 1.000000e+00 : f32
    %284 = vector.broadcast %cst_61 : f32 to vector<4x32xf32>
    %285 = arith.addf %284, %283 : vector<4x32xf32>
    %286 = arith.divf %284, %285 : vector<4x32xf32>
    %287 = vector.extract_strided_slice %276 {offsets = [0, 32], sizes = [4, 32], strides = [1, 1]} : vector<4x96xf32> to vector<4x32xf32>
    %288 = vector.extract_strided_slice %278 {offsets = [0, 32], sizes = [4, 32], strides = [1, 1]} : vector<4x96xf32> to vector<4x32xf32>
    %289 = arith.addf %287, %288 : vector<4x32xf32>
    %290 = arith.negf %289 : vector<4x32xf32>
    %291 = math.exp %290 : vector<4x32xf32>
    %cst_62 = arith.constant 1.000000e+00 : f32
    %292 = vector.broadcast %cst_62 : f32 to vector<4x32xf32>
    %293 = arith.addf %292, %291 : vector<4x32xf32>
    %294 = arith.divf %292, %293 : vector<4x32xf32>
    %295 = vector.extract_strided_slice %276 {offsets = [0, 64], sizes = [4, 32], strides = [1, 1]} : vector<4x96xf32> to vector<4x32xf32>
    %296 = vector.extract_strided_slice %278 {offsets = [0, 64], sizes = [4, 32], strides = [1, 1]} : vector<4x96xf32> to vector<4x32xf32>
    %297 = arith.addf %296, %24 : vector<4x32xf32>
    %298 = arith.mulf %286, %297 : vector<4x32xf32>
    %299 = arith.addf %295, %298 : vector<4x32xf32>
    %300 = math.tanh %299 : vector<4x32xf32>
    %cst_63 = arith.constant 1.000000e+00 : f32
    %301 = vector.broadcast %cst_63 : f32 to vector<4x32xf32>
    %302 = arith.subf %301, %294 : vector<4x32xf32>
    %303 = arith.mulf %302, %300 : vector<4x32xf32>
    %304 = arith.mulf %294, %273 : vector<4x32xf32>
    %305 = arith.addf %303, %304 : vector<4x32xf32>
    %cst_64 = arith.constant 6.000000e+00 : f32
    %306 = vector.broadcast %cst_64 : f32 to vector<4x32xf32>
    %307 = arith.cmpf ogt, %27, %306 : vector<4x32xf32>
    %308 = arith.extui %307 : vector<4x32xi1> to vector<4x32xi32>
    %309 = arith.sitofp %308 : vector<4x32xi32> to vector<4x32xf32>
    %310 = arith.mulf %309, %305 : vector<4x32xf32>
    %cst_65 = arith.constant 1.000000e+00 : f32
    %311 = vector.broadcast %cst_65 : f32 to vector<4x32xf32>
    %312 = arith.subf %311, %309 : vector<4x32xf32>
    %313 = arith.mulf %312, %273 : vector<4x32xf32>
    %314 = arith.addf %310, %313 : vector<4x32xf32>
    %315 = arith.mulf %309, %305 : vector<4x32xf32>
    %316 = arith.addf %275, %315 : vector<4x32xf32>
    %317 = vector.extract_strided_slice %20 {offsets = [28, 0], sizes = [4, 96], strides = [1, 1]} : vector<32x96xf32> to vector<4x96xf32>
    %318 = arith.truncf %314 : vector<4x32xf32> to vector<4x32xbf16>
    %cst_66 = arith.constant dense<0.000000e+00> : vector<4x96xf32>
    %319 = tpu.matmul %318, %21, %cst_66 {dimension_numbers = #tpu.dot_dimension_numbers<[1], [0], [0], [1], [0, 0, 1, 1], [], []>} : vector<4x32xbf16>, vector<32x96xbf16>, vector<4x96xf32> -> vector<4x96xf32>
    %320 = vector.extract_strided_slice %317 {offsets = [0, 0], sizes = [4, 32], strides = [1, 1]} : vector<4x96xf32> to vector<4x32xf32>
    %321 = vector.extract_strided_slice %319 {offsets = [0, 0], sizes = [4, 32], strides = [1, 1]} : vector<4x96xf32> to vector<4x32xf32>
    %322 = arith.addf %320, %321 : vector<4x32xf32>
    %323 = arith.negf %322 : vector<4x32xf32>
    %324 = math.exp %323 : vector<4x32xf32>
    %cst_67 = arith.constant 1.000000e+00 : f32
    %325 = vector.broadcast %cst_67 : f32 to vector<4x32xf32>
    %326 = arith.addf %325, %324 : vector<4x32xf32>
    %327 = arith.divf %325, %326 : vector<4x32xf32>
    %328 = vector.extract_strided_slice %317 {offsets = [0, 32], sizes = [4, 32], strides = [1, 1]} : vector<4x96xf32> to vector<4x32xf32>
    %329 = vector.extract_strided_slice %319 {offsets = [0, 32], sizes = [4, 32], strides = [1, 1]} : vector<4x96xf32> to vector<4x32xf32>
    %330 = arith.addf %328, %329 : vector<4x32xf32>
    %331 = arith.negf %330 : vector<4x32xf32>
    %332 = math.exp %331 : vector<4x32xf32>
    %cst_68 = arith.constant 1.000000e+00 : f32
    %333 = vector.broadcast %cst_68 : f32 to vector<4x32xf32>
    %334 = arith.addf %333, %332 : vector<4x32xf32>
    %335 = arith.divf %333, %334 : vector<4x32xf32>
    %336 = vector.extract_strided_slice %317 {offsets = [0, 64], sizes = [4, 32], strides = [1, 1]} : vector<4x96xf32> to vector<4x32xf32>
    %337 = vector.extract_strided_slice %319 {offsets = [0, 64], sizes = [4, 32], strides = [1, 1]} : vector<4x96xf32> to vector<4x32xf32>
    %338 = arith.addf %337, %24 : vector<4x32xf32>
    %339 = arith.mulf %327, %338 : vector<4x32xf32>
    %340 = arith.addf %336, %339 : vector<4x32xf32>
    %341 = math.tanh %340 : vector<4x32xf32>
    %cst_69 = arith.constant 1.000000e+00 : f32
    %342 = vector.broadcast %cst_69 : f32 to vector<4x32xf32>
    %343 = arith.subf %342, %335 : vector<4x32xf32>
    %344 = arith.mulf %343, %341 : vector<4x32xf32>
    %345 = arith.mulf %335, %314 : vector<4x32xf32>
    %346 = arith.addf %344, %345 : vector<4x32xf32>
    %cst_70 = arith.constant 7.000000e+00 : f32
    %347 = vector.broadcast %cst_70 : f32 to vector<4x32xf32>
    %348 = arith.cmpf ogt, %27, %347 : vector<4x32xf32>
    %349 = arith.extui %348 : vector<4x32xi1> to vector<4x32xi32>
    %350 = arith.sitofp %349 : vector<4x32xi32> to vector<4x32xf32>
    %351 = arith.mulf %350, %346 : vector<4x32xf32>
    %352 = arith.addf %316, %351 : vector<4x32xf32>
    %cst_71 = arith.constant 1.000000e+00 : f32
    %353 = vector.broadcast %cst_71 : f32 to vector<4x32xf32>
    %354 = arith.maximumf %27, %353 : vector<4x32xf32>
    %355 = arith.divf %352, %354 : vector<4x32xf32>
    %356 = arith.mulf %355, %355 : vector<4x32xf32>
    %cst_72 = arith.constant dense<0.000000e+00> : vector<4xf32>
    %357 = vector.multi_reduction <add>, %356, %cst_72 [1] : vector<4x32xf32> to vector<4xf32>
    %358 = vector.shape_cast %357 : vector<4xf32> to vector<4x1xf32>
    %cst_73 = arith.constant 1.000000e-24 : f32
    %359 = vector.broadcast %cst_73 : f32 to vector<4x1xf32>
    %360 = arith.maximumf %358, %359 : vector<4x1xf32>
    %361 = math.rsqrt %360 : vector<4x1xf32>
    %362 = vector.broadcast %361 : vector<4x1xf32> to vector<4x32xf32>
    %363 = arith.mulf %355, %362 : vector<4x32xf32>
    %cst_74 = arith.constant 0.000000e+00 : f32
    %364 = vector.broadcast %cst_74 : f32 to vector<4x128xf32>
    %c0_75 = arith.constant 0 : index
    %c0_76 = arith.constant 0 : index
    %365 = vector.load %arg11[%c0_75, %c0_76] : memref<4x128xf32, #tpu.memory_space<vmem>>, vector<4x128xf32>
    tpu.vector_store %arg11[%c0_75, %c0_76], %364 {strides = array<i32>} : memref<4x128xf32, #tpu.memory_space<vmem>>, vector<4x128xf32>,
    %c0_77 = arith.constant 0 : index
    %c0_78 = arith.constant 0 : index
    %366 = vector.load %arg11[%c0_77, %c0_78] : memref<4x128xf32, #tpu.memory_space<vmem>>, vector<4x32xf32>
    tpu.vector_store %arg11[%c0_77, %c0_78], %363 {strides = array<i32>} : memref<4x128xf32, #tpu.memory_space<vmem>>, vector<4x32xf32>,
    return
  }
  func.func @transform_0(%arg0: i32) -> (i32, i32) {
    %c0_i32 = arith.constant 0 : i32
    %c0_i32_0 = arith.constant 0 : i32
    %c0_i32_1 = arith.constant 0 : i32
    return %c0_i32, %c0_i32_0 : i32, i32
  }
  func.func @transform_1(%arg0: i32) -> (i32, i32) {
    %c0_i32 = arith.constant 0 : i32
    %c0_i32_0 = arith.constant 0 : i32
    %c0_i32_1 = arith.constant 0 : i32
    return %c0_i32, %c0_i32_0 : i32, i32
  }
  func.func @transform_2(%arg0: i32) -> (i32, i32) {
    %c0_i32 = arith.constant 0 : i32
    %c0_i32_0 = arith.constant 0 : i32
    %c0_i32_1 = arith.constant 0 : i32
    return %c0_i32, %c0_i32_0 : i32, i32
  }
  func.func @transform_3(%arg0: i32) -> (i32, i32) {
    %c0_i32 = arith.constant 0 : i32
    %c0_i32_0 = arith.constant 0 : i32
    %c0_i32_1 = arith.constant 0 : i32
    return %c0_i32, %c0_i32_0 : i32, i32
  }
  func.func @transform_4(%arg0: i32) -> (i32, i32) {
    %c0_i32 = arith.constant 0 : i32
    %c0_i32_0 = arith.constant 0 : i32
    %c0_i32_1 = arith.constant 0 : i32
    return %c0_i32, %c0_i32_0 : i32, i32
  }
  func.func @transform_5(%arg0: i32) -> (i32, i32) {
    %c0_i32 = arith.constant 0 : i32
    %c0_i32_0 = arith.constant 0 : i32
    %c0_i32_1 = arith.constant 0 : i32
    return %c0_i32, %c0_i32_0 : i32, i32
  }
  func.func @transform_6(%arg0: i32) -> (i32, i32) {
    %c0_i32 = arith.constant 0 : i32
    %c0_i32_0 = arith.constant 0 : i32
    %c0_i32_1 = arith.constant 0 : i32
    return %c0_i32, %c0_i32_0 : i32, i32
  }
  func.func @transform_7(%arg0: i32) -> (i32, i32) {
    %c0_i32 = arith.constant 0 : i32
    %c0_i32_0 = arith.constant 0 : i32
    %c0_i32_1 = arith.constant 0 : i32
    return %c0_i32, %c0_i32_0 : i32, i32
  }
  func.func @transform_8(%arg0: i32) -> (i32, i32) {
    %c0_i32 = arith.constant 0 : i32
    %c0_i32_0 = arith.constant 0 : i32
    %c0_i32_1 = arith.constant 0 : i32
    return %c0_i32, %c0_i32_0 : i32, i32
  }
  func.func @transform_9(%arg0: i32) -> (i32, i32) {
    %c0_i32 = arith.constant 0 : i32
    %c0_i32_0 = arith.constant 0 : i32
    %c0_i32_1 = arith.constant 0 : i32
    return %c0_i32, %c0_i32_0 : i32, i32
  }
  func.func @transform_10(%arg0: i32) -> (i32, i32) {
    %c0_i32 = arith.constant 0 : i32
    %c0_i32_0 = arith.constant 0 : i32
    %c0_i32_1 = arith.constant 0 : i32
    return %c0_i32, %c0_i32_0 : i32, i32
  }
}

</mosaic_0001>

<bundles_post_ra>
// kernel: tpu_custom_call.1
= control target key start
LH: loop header
LB: loop body
LE: loop exit
PB: predicated region body
PF: predicated region fallthrough
CT: control target
= control target key end

     0   :  { %16 = vsyncpa [#allocation3], 0  ;;  %s1928_s0 = inlined_call_operand.hbm [shape: bf16[16,64], index: 0, kind: input, shape index: {}]   ;;  %s1929_s1 = inlined_call_operand.hbm [shape: bf16[64,128], index: 1, kind: input, shape index: {}]   ;;  %s1930_s2 = inlined_call_operand.hbm [shape: f32[1,128], index: 2, kind: input, shape index: {}]   ;;  %s1931_s3 = inlined_call_operand.vmem [shape: bf16[32,32], index: 3, kind: input, shape index: {}]   ;;  %s1932_s4 = inlined_call_operand.hbm [shape: bf16[32,96], index: 4, kind: input, shape index: {}]   ;;  %s1933_s5 = inlined_call_operand.vmem [shape: f32[1,96], index: 5, kind: input, shape index: {}]   ;;  %s1934_s6 = inlined_call_operand.hbm [shape: bf16[32,96], index: 6, kind: input, shape index: {}]   ;;  %s1935_s7 = inlined_call_operand.vmem [shape: f32[1,32], index: 7, kind: input, shape index: {}]   ;;  %s1936_s8 = inlined_call_operand.vmem [shape: f32[4,1], index: 8, kind: input, shape index: {}]   ;;  %s1937_s9 = inlined_call_operand.hbm [shape: f32[16,128], index: 9, kind: output, shape index: {0}]   ;;  %s1938_s10 = inlined_call_operand.hbm [shape: f32[4,128], index: 10, kind: output, shape index: {1}]  }
   0x1   :  { %17 = vsyncpa [#allocation6], 0 }
   0x2   :  { %18 = vsyncpa [#allocation9], 0 }
   0x3   :  { %19 = vsyncpa [#allocation4], 0 }
   0x4   :  { %20 = vsyncpa [#allocation13], 0  ;;  %s1532_s13 = smov [#allocation5]   ;;  %s1533_s15 = smov [#allocation8]  }
   0x5   :  { %s38_s14 = sshll.u32 %s1532_s13, 4  ;;  %s62_s16 = sshll.u32 %s1533_s15, 4  ;;  %s39_s14 = int_to_ptr.vmem [resolvable:$true] %s38_s14  ;;  %s1603_s16 = int_to_ptr.vmem [resolvable:$true] %s62_s16 }
   0x6   :  { %s1368_s19 = scalar_lea.hbm %s1929_s1, 512 }
   0x7   :  { %p1369_p0 = scmp.ne.s32.totalorder %s1929_s1, %s1368_s19  ;;  %p1372_p1 = scmp.lt.u32.totalorder %s1368_s19, %s1929_s1 }
   0x9   :  { %p1374_p2 = pnand %p1372_p1, %p1369_p0 }
   0xb   :  { %1377 = shalt.err (!%p1374_p2)
}
   0xc   :  { %s1378_s24 = scalar_lea.vmem %s39_s14, 512  ;;  %p1383_p4 = scmp.lt.s32.totalorder %s39_s14, %s39_s14 }
   0xd   :  { %p1379_p3 = scmp.ne.s32.totalorder %s39_s14, %s1378_s24  ;;  %p1384_p5 = scmp.lt.s32.totalorder %s1378_s24, %s1378_s24 }
   0xf   :  { %p1385_p6 = por %p1384_p5, %p1383_p4 }
  0x11   :  { %p1386_p7 = pnand %p1385_p6, %p1379_p3 }
  0x13   :  { %1389 = shalt.err (!%p1386_p7)
}
  0x14   :  { %s1534_s25 = smov 64   ;;  %s1535_s26 = smov 4  }
  0x15   :  { %44 = dma.hbm_to_vmem [thread:$0]  %s1929_s1, 512, %s39_s14, [#allocation6], %s1534_s25, %s1534_s25, %s1535_s26  }
  0x16   :  { %s1390_s11 = scalar_lea.hbm %s1932_s4, 256 }
  0x17   :  { %p1391_p8 = scmp.ne.s32.totalorder %s1932_s4, %s1390_s11  ;;  %p1394_p9 = scmp.lt.u32.totalorder %s1390_s11, %s1932_s4 }
  0x19   :  { %p1396_p10 = pnand %p1394_p9, %p1391_p8 }
  0x1b   :  { %1399 = shalt.err (!%p1396_p10)
}
  0x1c   :  { %s1400_s18 = scalar_lea.vmem %s1603_s16, 256  ;;  %p1405_p12 = scmp.lt.s32.totalorder %s1603_s16, %s1603_s16 }
  0x1d   :  { %p1401_p11 = scmp.ne.s32.totalorder %s1603_s16, %s1400_s18  ;;  %p1406_p13 = scmp.lt.s32.totalorder %s1400_s18, %s1400_s18 }
  0x1f   :  { %p1407_p0 = por %p1406_p13, %p1405_p12 }
  0x21   :  { %p1408_p1 = pnand %p1407_p0, %p1401_p11 }
  0x23   :  { %1411 = shalt.err (!%p1408_p1)
}
  0x24   :  { %68 = dma.hbm_to_vmem [thread:$0]  %s1932_s4, 256, %s1603_s16, [#allocation9], %s1534_s25, %s1534_s25, %s1535_s26  }
  0x25   :  { %s1536_s19 = smov [#allocation2]   ;;  %s1537_s21 = smov [#allocation7]  }
  0x26   :  { %s26_s20 = sshll.u32 %s1536_s19, 4  ;;  %s51_s22 = sshll.u32 %s1537_s21, 4  ;;  %s27_s20 = int_to_ptr.vmem [resolvable:$true] %s26_s20  ;;  %s52_s22 = int_to_ptr.vmem [resolvable:$true] %s51_s22 }
  0x27   :  { %s1412_s27 = scalar_lea.hbm %s1928_s0, 128 }
  0x28   :  { %p1413_p2 = scmp.ne.s32.totalorder %s1928_s0, %s1412_s27  ;;  %p1416_p3 = scmp.lt.u32.totalorder %s1412_s27, %s1928_s0 }
  0x2a   :  { %p1418_p4 = pnand %p1416_p3, %p1413_p2 }
  0x2c   :  { %1421 = shalt.err (!%p1418_p4)
}
  0x2d   :  { %s1422_s4 = scalar_lea.vmem %s27_s20, 128  ;;  %p1427_p6 = scmp.lt.s32.totalorder %s27_s20, %s27_s20 }
  0x2e   :  { %p1423_p5 = scmp.ne.s32.totalorder %s27_s20, %s1422_s4  ;;  %p1428_p7 = scmp.lt.s32.totalorder %s1422_s4, %s1422_s4 }
  0x30   :  { %p1429_p8 = por %p1428_p7, %p1427_p6 }
  0x32   :  { %p1430_p9 = pnand %p1429_p8, %p1423_p5 }
  0x34   :  { %1433 = shalt.err (!%p1430_p9)
}
  0x35   :  { %32 = dma.hbm_to_vmem [thread:$0]  %s1928_s0, 128, %s27_s20, [#allocation3], %s1534_s25, %s1534_s25, %s1535_s26  }
  0x36   :  { %s1434_s17 = scalar_lea.hbm %s1930_s2, 16 }
  0x37   :  { %p1435_p10 = scmp.ne.s32.totalorder %s1930_s2, %s1434_s17  ;;  %p1438_p11 = scmp.lt.u32.totalorder %s1434_s17, %s1930_s2 }
  0x39   :  { %p1440_p12 = pnand %p1438_p11, %p1435_p10 }
  0x3b   :  { %1443 = shalt.err (!%p1440_p12)
}
  0x3c   :  { %s1444_s21 = scalar_lea.vmem %s52_s22, 16  ;;  %s1448_s23 = scalar_lea.vmem %s52_s22, 32 }
  0x3d   :  { %p1445_p13 = scmp.ne.s32.totalorder %s52_s22, %s1444_s21  ;;  %p1449_p0 = scmp.lt.s32.totalorder %s52_s22, %s52_s22 }
  0x3e   :  { %p1450_p1 = scmp.lt.s32.totalorder %s1448_s23, %s1444_s21 }
  0x40   :  { %p1451_p2 = por %p1450_p1, %p1449_p0 }
  0x42   :  { %p1452_p3 = pnand %p1451_p2, %p1445_p13 }
  0x44   :  { %1455 = shalt.err (!%p1452_p3)
}
  0x45   :  { %54 = dma.hbm_to_vmem [thread:$0]  %s1930_s2, 16, %s52_s22, [#allocation6]  }
  0x46   :  { %s1538_s24 = smov [#allocation10]   ;;  %s1456_s30 = scalar_lea.hbm %s1934_s6, 256 }
  0x47   :  { %s76_s27 = sshll.u32 %s1538_s24, 4  ;;  %p1457_p4 = scmp.ne.s32.totalorder %s1934_s6, %s1456_s30  ;;  %s77_s27 = int_to_ptr.vmem [resolvable:$true] %s76_s27 }
  0x48   :  { %p1460_p5 = scmp.lt.u32.totalorder %s1456_s30, %s1934_s6 }
  0x4a   :  { %p1462_p6 = pnand %p1460_p5, %p1457_p4 }
  0x4c   :  { %1465 = shalt.err (!%p1462_p6)
}
  0x4d   :  { %s1466_s13 = scalar_lea.vmem %s77_s27, 256  ;;  %p1471_p8 = scmp.lt.s32.totalorder %s77_s27, %s77_s27 }
  0x4e   :  { %p1467_p7 = scmp.ne.s32.totalorder %s77_s27, %s1466_s13  ;;  %p1472_p9 = scmp.lt.s32.totalorder %s1466_s13, %s1466_s13 }
  0x50   :  { %p1473_p10 = por %p1472_p9, %p1471_p8 }
  0x52   :  { %p1474_p11 = pnand %p1473_p10, %p1467_p7 }
  0x54   :  { %1477 = shalt.err (!%p1474_p11)
}
  0x55   :  { %82 = dma.hbm_to_vmem [thread:$0]  %s1934_s6, 256, %s77_s27, [#allocation9], %s1534_s25, %s1534_s25, %s1535_s26  }
  0x56   :  { %1522 = dma.done.wait [#allocation3], 128  }
  0x57   :  { %1523 = vsyncadd [#allocation3], 4294967168 }
  0x58   :  { %1524 = dma.done.wait [#allocation6], 528  }
  0x59   :  { %1525 = vsyncadd [#allocation6], 4294966768 }
  0x5a   :  { %1526 = dma.done.wait [#allocation9], 512  }
  0x5b   :  { %1527 = vsyncadd [#allocation9], 4294966784  ;;  %v1539_v0 = vmov 0.0   ;;  %v1540_v1 = vmov 0   ;;  %vm1541_vm0 = vmmov 0   ;;  %v1301_v2 = vld [vmem:[#allocation8] sm:$0xff]  }
  0x5c   :  { %1087 = vst [vmem:[#allocation12] sm:$0xf] %v1539_v0  ;;  %1299 = vset.pattern.permute.xlu1 %v1540_v1  ;;  %1199 = vmatprep.subr.bf16.mxu0 %v1539_v0  ;;  %v1302_v3 = vld [vmem:[#allocation8 + $0x8] sm:$0xff]   ;;  %vm245_vm1 = vcmask 261120   ;;  %v1303_v4 = vld [vmem:[%s1931_s3] sm:$0xff]   ;;  %v1304_v5 = vld [vmem:[%s1931_s3 + $0x8] sm:$0xff]  }
  0x5d   :  { %1207 = vmatprep.mubr.msk.bf16.mxu0 %vm1541_vm0, %v1539_v0  ;;  %1300 = vset.pattern.permute.xlu0 %v1540_v1  ;;  %v1693_v6 = vld [vmem:[#allocation10] sm:$0xff]   ;;  %v1702_v8 = vld [vmem:[#allocation10 + $0x8] sm:$0xff]   ;;  %v1308_v36 = vld [vmem:[#allocation5 + $0x8] sm:$0xff]   ;;  %s1542_s19 = smov 96   ;;  %vm149_vm2 = vcmask 523264   ;;  %vm1080_vm11 = vcmask 257024  }
  0x5e   :  { %1211 = vmatprep.subr.bf16.mxu1 %v1301_v2  ;;  %1215 = vmatprep.mubr.msk.bf16.mxu1 %vm245_vm1, %v1303_v4  ;;  %v1140_v7 = vld [vmem:[%s1935_s7] ss:$0 sm:$0xff]  ;;  %v1307_v34 = vld [vmem:[#allocation5] sm:$0xff]   ;;  %v1309_v37 = vld [vmem:[#allocation5 + $0x10] sm:$0xff]  }
  0x5f   :  { %1212 = vmatpush3.bf16.msra.mxu1 %v1301_v2  ;;  %379 = vrot.lane.b32.xlu0 %v1140_v7, %s1534_s25  ;;  %v1133_v9 = vld [vmem:[%s1933_s5] ss:$0 sm:$0xff]  ;;  %v1755_v52 = vld [vmem:[#allocation7] ss:$0 sm:$0xff] }
  0x60   :  { %1213 = vmatprep.subr.bf16.mxu1 %v1302_v3  ;;  %v311_v31 = vld [vmem:[%s1936_s8] sm:$0xf]  ;;  %1200 = vmatpush3.bf16.msra.mxu0 %v1307_v34  ;;  %s1543_s8 = smov 32  }
  0x61   :  { %1201 = vmatprep.subr.bf16.mxu0 %v1539_v0  ;;  %v1310_v38 = vld [vmem:[#allocation5 + $0x18] sm:$0xff]  }
  0x62   :  { %v1311_v39 = vld [vmem:[#allocation2] sm:$0xff]  }
  0x63   :  { %1214 = vmatpush3.bf16.msra.mxu1 %v1302_v3 }
  0x64   :  { %1219 = vmatprep.subr.bf16.mxu1 %v1539_v0  ;;  %1202 = vmatpush3.bf16.msra.mxu0 %v1308_v36 }
  0x65   :  { %1203 = vmatprep.subr.bf16.mxu0 %v1539_v0 }
  0x66   :  { %1216 = vmatmul.mubr.msk.bf16.vlgmr.msra.gmra.mrb[0].mxu1 %vm245_vm1, %v1304_v5 }
  0x67   :  { %1220 = vmatpush3.bf16.msra.mxu1 %v1693_v6  ;;  %1223 = vmatprep.mubr.msk.bf16.mxu1 %vm1541_vm0, %v1539_v0 }
  0x68   :  { %1221 = vmatprep.subr.bf16.mxu1 %v1539_v0  ;;  %1204 = vmatpush3.bf16.msra.mxu0 %v1309_v37 }
  0x69   :  { %1205 = vmatprep.subr.bf16.mxu0 %v1539_v0 }
  0x6b   :  { %1222 = vmatpush3.bf16.msra.mxu1 %v1702_v8 }
  0x6c   :  { %1235 = vmatprep.subr.bf16.mxu1 %v1539_v0  ;;  %1206 = vmatpush3.bf16.msra.mxu0 %v1310_v38 }
  0x6d   :  { %1227 = vmatprep.subr.bf16.mxu0 %v1539_v0 }
  0x6e   :  { %1224 = vmatmul.mubr.bf16.vlgmr.msra.gmra.mrb[4].mxu1 %v1540_v1 }
  0x6f   :  { %1236 = vmatpush3.bf16.msra.mxu1 %v1693_v6  ;;  %1239 = vmatprep.mubr.msk.bf16.mxu1 %vm1541_vm0, %v1539_v0 }
  0x70   :  { %1237 = vmatprep.subr.bf16.mxu1 %v1539_v0  ;;  %1208 = vmatmul.mubr.msk.bf16.vlgmr.msra.gmra.mrb[0].mxu0 %vm149_vm2, %v1311_v39 }
  0x71   :  { %1228 = vmatpush3.bf16.msra.mxu0 %v1693_v6  ;;  %1231 = vmatprep.mubr.msk.bf16.mxu0 %vm1541_vm0, %v1539_v0 }
  0x72   :  { %1229 = vmatprep.subr.bf16.mxu0 %v1539_v0 }
  0x73   :  { %1238 = vmatpush3.bf16.msra.mxu1 %v1702_v8 }
  0x74   :  { %1251 = vmatprep.subr.bf16.mxu1 %v1539_v0 }
  0x75   :  { %1230 = vmatpush3.bf16.msra.mxu0 %v1702_v8 }
  0x76   :  { %1243 = vmatprep.subr.bf16.mxu0 %v1539_v0 }
  0xd1   :  { %v1724_v17 = vpop.permute.xlu0 %379 }
 0x139   :  { %v1217_v10 = vpop.f32.mrb[0].mxu1 }
 0x13a   :  { %v1718_v11 = vadd.f32 %v1217_v10, %v1133_v9  ;;  %v286_v12 = vpop.f32.mrb[1].mxu1 }
 0x13b   :  { %v1218_v13 = vpop.f32.mrb[2].mxu1  ;;  %v1728_v23 = vadd.f32 %v1133_v9, %v286_v12 }
 0x13c   :  { %v1720_v14 = vadd.f32 %v1218_v13, %v1133_v9  ;;  %v289_v15 = vpop.f32.mrb[3].mxu1 }
 0x13d   :  { %v1722_v16 = vadd.f32 %v1133_v9, %v289_v15 }
 0x141   :  { %v366_v18 = vpop.f32.mrb[4].mxu1 }
 0x142   :  { %v1225_v19 = vpop.f32.mrb[5].mxu1  ;;  %v382_v20 = vadd.f32 %v1724_v17, %v366_v18  ;;  %v372_v24 = vadd.f32 %v366_v18, %v1728_v23 }
 0x143   :  { %v369_v21 = vpop.f32.mrb[6].mxu1  ;;  %v1757_v53 = vpop.f32.mrb[0].mxu0 }
 0x144   :  { %384 = vrot.lane.b32.xlu0 %v382_v20, %s1534_s25  ;;  %v1226_v22 = vpop.f32.mrb[7].mxu1  ;;  %v1143_v25 = vmul.f32 -1.442695, %v372_v24  ;;  %v1209_v54 = vpop.f32.mrb[1].mxu0 }
 0x145   :  { %v190_v55 = vpop.f32.mrb[2].mxu0 }
 0x146   :  { %1312 = vpow2.f32 %v1143_v25  ;;  %v1760_v56 = vadd.f32 %v1755_v52, %v190_v55  ;;  %v1210_v57 = vpop.f32.mrb[3].mxu0 }
 0x150   :  { %v1313_v26 = vpop.eup %1312 }
 0x151   :  { %v376_v27 = vadd.f32 1.0, %v1313_v26 }
 0x153   :  { %1314 = vrcp.f32 %v376_v27 }
 0x15d   :  { %v1315_v28 = vpop.eup %1314 }
 0x15e   :  { %v394_v42 = vsub.f32 1.0, %v1315_v28  ;;  %v400_v45 = vmul.f32 0.0, %v1315_v28 }
 0x1b6   :  { %v385_v29 = vpop.permute.xlu0 %384 }
 0x1b7   :  { %v387_v30 = vmul.f32 %v1315_v28, %v385_v29 }
 0x1b9   :  { %389 = vrot.lane.b32.xlu1 %v387_v30, %s1534_s25 }
 0x1bd   :  { %314 = vperm.xlu1 %1299, %v311_v31  }
 0x22b   :  { %v390_v32 = vpop.permute.xlu1 %389 }
 0x22c   :  { %v392_v33 = vadd.f32 %v390_v32, %v1728_v23 }
 0x22e   :  { %1316 = vtanh.f32 %v392_v33 }
 0x238   :  { %v1317_v35 = vpop.eup %1316 }
 0x239   :  { %396 = vrot.lane.b32.xlu0 %v1317_v35, %s1542_s19 }
 0x23c   :  { %v1747_v40 = vpop.permute.xlu1 %314 }
 0x23d   :  { %vm402_vm3 = vcmp.gt.f32.partialorder %v1747_v40, 0.0  ;;  %vm491_vm4 = vcmp.gt.f32.partialorder %v1747_v40, 1.0  ;;  %vm587_vm5 = vcmp.gt.f32.partialorder %v1747_v40, 2.0  ;;  %vm680_vm6 = vcmp.gt.f32.partialorder %v1747_v40, 3.0 }
 0x23e   :  { %v1144_v41 = vsel %vm402_vm3, 1.0, %v1539_v0  ;;  %v1147_v18 = vsel %vm491_vm4, 1.0, %v1539_v0  ;;  %vm776_vm7 = vcmp.gt.f32.partialorder %v1747_v40, 4.0  ;;  %vm869_vm8 = vcmp.gt.f32.partialorder %v1747_v40, 5.0 }
 0x23f   :  { %v406_v43 = vsub.f32 1.0, %v1144_v41  ;;  %v500_v20 = vsub.f32 1.0, %v1147_v18  ;;  %vm965_vm9 = vcmp.gt.f32.partialorder %v1747_v40, 6.0  ;;  %vm1058_vm10 = vcmp.gt.f32.partialorder %v1747_v40, 7.0 }
 0x241   :  { %v407_v48 = vmul.f32 0.0, %v406_v43 }
 0x2ab   :  { %v397_v44 = vpop.permute.xlu0 %396 }
 0x2ac   :  { %v399_v46 = vmul.f32 %v397_v44, %v394_v42 }
 0x2ae   :  { %v401_v47 = vadd.f32 %v400_v45, %v399_v46 }
 0x2b0   :  { %v1751_v49 = vmul.f32 %v1144_v41, %v401_v47 }
 0x2b2   :  { %v408_v50 = vadd.f32 %v407_v48, %v1751_v49 }
 0x2b4   :  { %v410_v51 = vpack.c.bf16 %v408_v50, %v408_v50  ;;  %v501_v21 = vmul.f32 %v500_v20, %v408_v50  ;;  %v487_v24 = vrot.slane %v408_v50, 4  ;;  %v1150_v50 = vsel %vm587_vm5, 1.0, %v1539_v0 }
 0x2b5   :  { %v591_v54 = vsub.f32 1.0, %v1150_v50 }
 0x2b6   :  { %412 = vrot.lane.b32.xlu1 %v410_v51, %s1542_s19 }
 0x328   :  { %v413_v58 = vpop.permute.xlu1 %412 }
 0x329   :  { %1232 = vmatmul.mubr.msk.bf16.vlgmr.msra.gmra.mrb[4].mxu0 %vm245_vm1, %v413_v58 }
 0x32a   :  { %1244 = vmatpush3.bf16.msra.mxu0 %v1693_v6  ;;  %1247 = vmatprep.mubr.msk.bf16.mxu0 %vm1541_vm0, %v1539_v0 }
 0x32b   :  { %1245 = vmatprep.subr.bf16.mxu0 %v1539_v0 }
 0x32e   :  { %1246 = vmatpush3.bf16.msra.mxu0 %v1702_v8 }
 0x32f   :  { %1259 = vmatprep.subr.bf16.mxu0 %v1539_v0 }
 0x3fc   :  { %v451_v59 = vpop.f32.mrb[4].mxu0 }
 0x3fd   :  { %v467_v60 = vadd.f32 %v451_v59, %v1724_v17  ;;  %v1233_v61 = vpop.f32.mrb[5].mxu0  ;;  %v458_v2 = vrot.slane %v451_v59, 4 }
 0x3fe   :  { %v454_v62 = vpop.f32.mrb[6].mxu0 }
 0x3ff   :  { %v1234_v63 = vpop.f32.mrb[7].mxu0  ;;  %v469_v1 = vrot.slane %v467_v60, 4  ;;  %v460_v3 = vadd.f32 %v458_v2, %v1728_v23 }
 0x401   :  { %470 = vrot.lane.b32.xlu0 %v469_v1, %s1534_s25  ;;  %v1146_v4 = vmul.f32 -1.442695, %v460_v3 }
 0x403   :  { %1318 = vpow2.f32 %v1146_v4 }
 0x40d   :  { %v1319_v5 = vpop.eup %1318 }
 0x40e   :  { %v464_v7 = vadd.f32 1.0, %v1319_v5 }
 0x410   :  { %1320 = vrcp.f32 %v464_v7 }
 0x41a   :  { %v1321_v9 = vpop.eup %1320 }
 0x41b   :  { %v480_v22 = vsub.f32 1.0, %v1321_v9  ;;  %v489_v26 = vmul.f32 %v1321_v9, %v487_v24 }
 0x473   :  { %v471_v10 = vpop.permute.xlu0 %470 }
 0x474   :  { %v473_v12 = vmul.f32 %v1321_v9, %v471_v10 }
 0x476   :  { %475 = vrot.lane.b32.xlu1 %v473_v12, %s1534_s25 }
 0x4e8   :  { %v476_v13 = vpop.permute.xlu1 %475 }
 0x4e9   :  { %v478_v15 = vadd.f32 %v476_v13, %v1728_v23 }
 0x4eb   :  { %1322 = vtanh.f32 %v478_v15 }
 0x4f5   :  { %v1323_v19 = vpop.eup %1322 }
 0x4f6   :  { %482 = vrot.lane.b32.xlu0 %v1323_v19, %s1542_s19 }
 0x4fa   :  { %503 = vrot.lane.b32.xlu0 %v501_v21, %s1542_s19 }
 0x568   :  { %v483_v25 = vpop.permute.xlu0 %482 }
 0x569   :  { %v485_v27 = vmul.f32 %v483_v25, %v480_v22 }
 0x56b   :  { %v490_v28 = vadd.f32 %v489_v26, %v485_v27 }
 0x56c   :  { %v504_v31 = vpop.permute.xlu0 %503 }
 0x56d   :  { %v495_v29 = vrot.slane %v490_v28, 4  ;;  %v1153_v28 = vsel %vm680_vm6, 1.0, %v1539_v0 }
 0x56f   :  { %496 = vrot.lane.b32.xlu1 %v495_v29, %s1542_s19 }
 0x5e1   :  { %v497_v23 = vpop.permute.xlu1 %496 }
 0x5e2   :  { %v1779_v30 = vmul.f32 %v1147_v18, %v497_v23  ;;  %v689_v23 = vsub.f32 1.0, %v1153_v28 }
 0x5e4   :  { %v506_v32 = vadd.f32 %v504_v31, %v1779_v30 }
 0x5e6   :  { %v512_v33 = vpack.c.bf16 %v506_v32, %v506_v32  ;;  %v592_v55 = vmul.f32 %v591_v54, %v506_v32 }
 0x5e8   :  { %1240 = vmatmul.mubr.msk.bf16.vlgmr.msra.gmra.mrb[8].mxu1 %vm245_vm1, %v512_v33 }
 0x5e9   :  { %1252 = vmatpush3.bf16.msra.mxu1 %v1693_v6  ;;  %1255 = vmatprep.mubr.msk.bf16.mxu1 %vm1541_vm0, %v1539_v0 }
 0x5ea   :  { %1253 = vmatprep.subr.bf16.mxu1 %v1539_v0 }
 0x5ed   :  { %1254 = vmatpush3.bf16.msra.mxu1 %v1702_v8 }
 0x5ee   :  { %1267 = vmatprep.subr.bf16.mxu1 %v1539_v0 }
 0x6bb   :  { %v550_v34 = vpop.f32.mrb[8].mxu1 }
 0x6bc   :  { %v1241_v35 = vpop.f32.mrb[9].mxu1  ;;  %v563_v36 = vadd.f32 %v550_v34, %v1724_v17  ;;  %v556_v39 = vadd.f32 %v550_v34, %v1722_v16 }
 0x6bd   :  { %v553_v37 = vpop.f32.mrb[10].mxu1 }
 0x6be   :  { %565 = vrot.lane.b32.xlu1 %v563_v36, %s1534_s25  ;;  %v1242_v38 = vpop.f32.mrb[11].mxu1  ;;  %v1149_v41 = vmul.f32 -1.442695, %v556_v39 }
 0x6c0   :  { %1324 = vpow2.f32 %v1149_v41 }
 0x6ca   :  { %v1325_v42 = vpop.eup %1324 }
 0x6cb   :  { %v560_v43 = vadd.f32 1.0, %v1325_v42 }
 0x6cd   :  { %1326 = vrcp.f32 %v560_v43 }
 0x6d7   :  { %v1327_v44 = vpop.eup %1326 }
 0x6d8   :  { %v575_v58 = vsub.f32 1.0, %v1327_v44 }
 0x730   :  { %v566_v45 = vpop.permute.xlu1 %565 }
 0x731   :  { %v568_v46 = vmul.f32 %v1327_v44, %v566_v45 }
 0x733   :  { %570 = vrot.lane.b32.xlu0 %v568_v46, %s1534_s25 }
 0x737   :  { %582 = vrot.lane.b32.xlu0 %v506_v32, %s1543_s8 }
 0x7a5   :  { %v571_v47 = vpop.permute.xlu0 %570 }
 0x7a6   :  { %v573_v48 = vadd.f32 %v571_v47, %v1722_v16 }
 0x7a8   :  { %1328 = vtanh.f32 %v573_v48 }
 0x7a9   :  { %v583_v57 = vpop.permute.xlu0 %582 }
 0x7aa   :  { %v585_v60 = vmul.f32 %v1327_v44, %v583_v57 }
 0x7b2   :  { %v1329_v51 = vpop.eup %1328 }
 0x7b3   :  { %577 = vrot.lane.b32.xlu1 %v1329_v51, %s1542_s19 }
 0x7b7   :  { %594 = vrot.lane.b32.xlu1 %v592_v55, %s1543_s8 }
 0x825   :  { %v578_v59 = vpop.permute.xlu1 %577 }
 0x826   :  { %v580_v61 = vmul.f32 %v578_v59, %v575_v58 }
 0x828   :  { %v586_v62 = vadd.f32 %v585_v60, %v580_v61 }
 0x829   :  { %v595_v1 = vpop.permute.xlu1 %594 }
 0x82a   :  { %v1799_v63 = vmul.f32 %v1150_v50, %v586_v62  ;;  %v1156_v62 = vsel %vm776_vm7, 1.0, %v1539_v0 }
 0x82c   :  { %v597_v2 = vadd.f32 %v595_v1, %v1799_v63 }
 0x82e   :  { %v599_v3 = vpack.c.bf16 %v597_v2, %v597_v2  ;;  %v690_v31 = vmul.f32 %v689_v23, %v597_v2  ;;  %v676_v32 = vrot.slane %v597_v2, 4  ;;  %v780_v2 = vsub.f32 1.0, %v1156_v62 }
 0x830   :  { %601 = vrot.lane.b32.xlu0 %v599_v3, %s1542_s19 }
 0x8a2   :  { %v602_v4 = vpop.permute.xlu0 %601 }
 0x8a3   :  { %1248 = vmatmul.mubr.msk.bf16.vlgmr.msra.gmra.mrb[8].mxu0 %vm245_vm1, %v602_v4 }
 0x8a4   :  { %1260 = vmatpush3.bf16.msra.mxu0 %v1693_v6  ;;  %1263 = vmatprep.mubr.msk.bf16.mxu0 %vm1541_vm0, %v1539_v0 }
 0x8a5   :  { %1261 = vmatprep.subr.bf16.mxu0 %v1539_v0 }
 0x8a8   :  { %1262 = vmatpush3.bf16.msra.mxu0 %v1702_v8 }
 0x8a9   :  { %1275 = vmatprep.subr.bf16.mxu0 %v1539_v0 }
 0x976   :  { %v640_v5 = vpop.f32.mrb[8].mxu0 }
 0x977   :  { %v656_v7 = vadd.f32 %v640_v5, %v1724_v17  ;;  %v1249_v9 = vpop.f32.mrb[9].mxu0  ;;  %v647_v15 = vrot.slane %v640_v5, 4 }
 0x978   :  { %v643_v10 = vpop.f32.mrb[10].mxu0 }
 0x979   :  { %v1250_v12 = vpop.f32.mrb[11].mxu0  ;;  %v658_v13 = vrot.slane %v656_v7, 4  ;;  %v649_v18 = vadd.f32 %v647_v15, %v1722_v16 }
 0x97b   :  { %659 = vrot.lane.b32.xlu1 %v658_v13, %s1534_s25  ;;  %v1152_v19 = vmul.f32 -1.442695, %v649_v18 }
 0x97d   :  { %1330 = vpow2.f32 %v1152_v19 }
 0x987   :  { %v1331_v20 = vpop.eup %1330 }
 0x988   :  { %v653_v21 = vadd.f32 1.0, %v1331_v20 }
 0x98a   :  { %1332 = vrcp.f32 %v653_v21 }
 0x994   :  { %v1333_v22 = vpop.eup %1332 }
 0x995   :  { %v669_v33 = vsub.f32 1.0, %v1333_v22  ;;  %v678_v35 = vmul.f32 %v1333_v22, %v676_v32 }
 0x9ed   :  { %v660_v24 = vpop.permute.xlu1 %659 }
 0x9ee   :  { %v662_v25 = vmul.f32 %v1333_v22, %v660_v24 }
 0x9f0   :  { %664 = vrot.lane.b32.xlu0 %v662_v25, %s1534_s25 }
 0xa62   :  { %v665_v26 = vpop.permute.xlu0 %664 }
 0xa63   :  { %v667_v27 = vadd.f32 %v665_v26, %v1722_v16 }
 0xa65   :  { %1334 = vtanh.f32 %v667_v27 }
 0xa6f   :  { %v1335_v29 = vpop.eup %1334 }
 0xa70   :  { %671 = vrot.lane.b32.xlu1 %v1335_v29, %s1542_s19 }
 0xa74   :  { %692 = vrot.lane.b32.xlu1 %v690_v31, %s1542_s19 }
 0xae2   :  { %v672_v34 = vpop.permute.xlu1 %671 }
 0xae3   :  { %v674_v36 = vmul.f32 %v672_v34, %v669_v33 }
 0xae5   :  { %v679_v37 = vadd.f32 %v678_v35, %v674_v36  ;;  %v1159_v36 = vsel %vm869_vm8, 1.0, %v1539_v0 }
 0xae6   :  { %v693_v41 = vpop.permute.xlu1 %692 }
 0xae7   :  { %v684_v38 = vrot.slane %v679_v37, 4 }
 0xae9   :  { %685 = vrot.lane.b32.xlu0 %v684_v38, %s1542_s19  ;;  %v878_v38 = vsub.f32 1.0, %v1159_v36 }
 0xb5b   :  { %v686_v16 = vpop.permute.xlu0 %685 }
 0xb5c   :  { %v1820_v39 = vmul.f32 %v1153_v28, %v686_v16 }
 0xb5e   :  { %v695_v42 = vadd.f32 %v693_v41, %v1820_v39 }
 0xb60   :  { %v701_v43 = vpack.c.bf16 %v695_v42, %v695_v42  ;;  %v781_v3 = vmul.f32 %v780_v2, %v695_v42 }
 0xb62   :  { %1256 = vmatmul.mubr.msk.bf16.vlgmr.msra.gmra.mrb[12].mxu1 %vm245_vm1, %v701_v43 }
 0xb63   :  { %1268 = vmatpush3.bf16.msra.mxu1 %v1693_v6  ;;  %1271 = vmatprep.mubr.msk.bf16.mxu1 %vm1541_vm0, %v1539_v0 }
 0xb64   :  { %1269 = vmatprep.subr.bf16.mxu1 %v1539_v0 }
 0xb67   :  { %1270 = vmatpush3.bf16.msra.mxu1 %v1702_v8 }
 0xc35   :  { %v739_v44 = vpop.f32.mrb[12].mxu1 }
 0xc36   :  { %v1257_v45 = vpop.f32.mrb[13].mxu1  ;;  %v752_v46 = vadd.f32 %v739_v44, %v1724_v17  ;;  %v745_v50 = vadd.f32 %v739_v44, %v1718_v11 }
 0xc37   :  { %v742_v47 = vpop.f32.mrb[14].mxu1 }
 0xc38   :  { %754 = vrot.lane.b32.xlu0 %v752_v46, %s1534_s25  ;;  %v1258_v48 = vpop.f32.mrb[15].mxu1  ;;  %v1155_v51 = vmul.f32 -1.442695, %v745_v50 }
 0xc3a   :  { %1336 = vpow2.f32 %v1155_v51 }
 0xc44   :  { %v1337_v54 = vpop.eup %1336 }
 0xc45   :  { %v749_v55 = vadd.f32 1.0, %v1337_v54 }
 0xc47   :  { %1338 = vrcp.f32 %v749_v55 }
 0xc51   :  { %v1339_v57 = vpop.eup %1338 }
 0xc52   :  { %v764_v5 = vsub.f32 1.0, %v1339_v57 }
 0xcaa   :  { %v755_v58 = vpop.permute.xlu0 %754 }
 0xcab   :  { %v757_v59 = vmul.f32 %v1339_v57, %v755_v58 }
 0xcad   :  { %759 = vrot.lane.b32.xlu1 %v757_v59, %s1534_s25 }
 0xcb1   :  { %771 = vrot.lane.b32.xlu1 %v695_v42, %s1543_s8 }
 0xd1f   :  { %v760_v60 = vpop.permute.xlu1 %759 }
 0xd20   :  { %v762_v61 = vadd.f32 %v760_v60, %v1718_v11 }
 0xd22   :  { %1340 = vtanh.f32 %v762_v61 }
 0xd23   :  { %v772_v4 = vpop.permute.xlu1 %771 }
 0xd24   :  { %v774_v9 = vmul.f32 %v1339_v57, %v772_v4 }
 0xd2c   :  { %v1341_v1 = vpop.eup %1340 }
 0xd2d   :  { %766 = vrot.lane.b32.xlu0 %v1341_v1, %s1542_s19 }
 0xd31   :  { %783 = vrot.lane.b32.xlu0 %v781_v3, %s1543_s8 }
 0xd9f   :  { %v767_v7 = vpop.permute.xlu0 %766 }
 0xda0   :  { %v769_v10 = vmul.f32 %v767_v7, %v764_v5 }
 0xda2   :  { %v775_v12 = vadd.f32 %v774_v9, %v769_v10  ;;  %v1162_v10 = vsel %vm965_vm9, 1.0, %v1539_v0 }
 0xda3   :  { %v784_v15 = vpop.permute.xlu0 %783 }
 0xda4   :  { %v1839_v13 = vmul.f32 %v1156_v62, %v775_v12 }
 0xda6   :  { %v786_v18 = vadd.f32 %v784_v15, %v1839_v13  ;;  %v969_v15 = vsub.f32 1.0, %v1162_v10 }
 0xda8   :  { %v788_v19 = vpack.c.bf16 %v786_v18, %v786_v18  ;;  %v879_v16 = vmul.f32 %v878_v38, %v786_v18  ;;  %v865_v41 = vrot.slane %v786_v18, 4 }
 0xdaa   :  { %790 = vrot.lane.b32.xlu1 %v788_v19, %s1542_s19 }
 0xe1c   :  { %v791_v20 = vpop.permute.xlu1 %790 }
 0xe1d   :  { %1264 = vmatmul.mubr.msk.bf16.vlgmr.msra.gmra.mrb[12].mxu0 %vm245_vm1, %v791_v20 }
 0xe1e   :  { %1276 = vmatpush3.bf16.msra.mxu0 %v1693_v6  ;;  %1279 = vmatprep.mubr.msk.bf16.mxu0 %vm1541_vm0, %v1539_v0 }
 0xe1f   :  { %1277 = vmatprep.subr.bf16.mxu0 %v1539_v0 }
 0xe22   :  { %1278 = vmatpush3.bf16.msra.mxu0 %v1702_v8 }
 0xef0   :  { %v829_v21 = vpop.f32.mrb[12].mxu0 }
 0xef1   :  { %v845_v22 = vadd.f32 %v829_v21, %v1724_v17  ;;  %v1265_v24 = vpop.f32.mrb[13].mxu0  ;;  %v836_v28 = vrot.slane %v829_v21, 4 }
 0xef2   :  { %v832_v25 = vpop.f32.mrb[14].mxu0 }
 0xef3   :  { %v1266_v26 = vpop.f32.mrb[15].mxu0  ;;  %v847_v27 = vrot.slane %v845_v22, 4  ;;  %v838_v29 = vadd.f32 %v836_v28, %v1718_v11 }
 0xef5   :  { %848 = vrot.lane.b32.xlu0 %v847_v27, %s1534_s25  ;;  %v1158_v6 = vmul.f32 -1.442695, %v838_v29 }
 0xef7   :  { %1342 = vpow2.f32 %v1158_v6 }
 0xf01   :  { %v1343_v23 = vpop.eup %1342 }
 0xf02   :  { %v842_v31 = vadd.f32 1.0, %v1343_v23 }
 0xf04   :  { %1344 = vrcp.f32 %v842_v31 }
 0xf0e   :  { %v1345_v32 = vpop.eup %1344 }
 0xf0f   :  { %v858_v42 = vsub.f32 1.0, %v1345_v32  ;;  %v867_v44 = vmul.f32 %v1345_v32, %v865_v41 }
 0xf67   :  { %v849_v33 = vpop.permute.xlu0 %848 }
 0xf68   :  { %v851_v8 = vmul.f32 %v1345_v32, %v849_v33 }
 0xf6a   :  { %853 = vrot.lane.b32.xlu1 %v851_v8, %s1534_s25 }
 0xfdc   :  { %v854_v34 = vpop.permute.xlu1 %853 }
 0xfdd   :  { %v856_v35 = vadd.f32 %v854_v34, %v1718_v11 }
 0xfdf   :  { %1346 = vtanh.f32 %v856_v35 }
 0xfe9   :  { %v1347_v37 = vpop.eup %1346 }
 0xfea   :  { %860 = vrot.lane.b32.xlu0 %v1347_v37, %s1542_s19 }
 0xfee   :  { %881 = vrot.lane.b32.xlu0 %v879_v16, %s1542_s19 }
0x105c   :  { %v861_v43 = vpop.permute.xlu0 %860 }
0x105d   :  { %v863_v45 = vmul.f32 %v861_v43, %v858_v42 }
0x105f   :  { %v868_v46 = vadd.f32 %v867_v44, %v863_v45 }
0x1060   :  { %v882_v50 = vpop.permute.xlu0 %881 }
0x1061   :  { %v873_v47 = vrot.slane %v868_v46, 4 }
0x1063   :  { %874 = vrot.lane.b32.xlu1 %v873_v47, %s1542_s19 }
0x10d5   :  { %v875_v11 = vpop.permute.xlu1 %874 }
0x10d6   :  { %v1859_v48 = vmul.f32 %v1159_v36, %v875_v11 }
0x10d8   :  { %v884_v51 = vadd.f32 %v882_v50, %v1859_v48 }
0x10da   :  { %v890_v54 = vpack.c.bf16 %v884_v51, %v884_v51  ;;  %v970_v18 = vmul.f32 %v969_v15, %v884_v51 }
0x10dc   :  { %1272 = vmatmul.mubr.msk.bf16.vlgmr.msra.gmra.mrb[16].mxu1 %vm245_vm1, %v890_v54 }
0x11af   :  { %v928_v55 = vpop.f32.mrb[16].mxu1 }
0x11b0   :  { %v1273_v57 = vpop.f32.mrb[17].mxu1  ;;  %v941_v58 = vadd.f32 %v928_v55, %v1724_v17  ;;  %v934_v61 = vadd.f32 %v928_v55, %v1720_v14 }
0x11b1   :  { %v931_v59 = vpop.f32.mrb[18].mxu1 }
0x11b2   :  { %943 = vrot.lane.b32.xlu1 %v941_v58, %s1534_s25  ;;  %v1274_v60 = vpop.f32.mrb[19].mxu1  ;;  %v1161_v62 = vmul.f32 -1.442695, %v934_v61 }
0x11b4   :  { %1348 = vpow2.f32 %v1161_v62  ;;  %v1072_v62 = vmax.f32 %v1747_v40, 1.0 }
0x11be   :  { %v1349_v1 = vpop.eup %1348 }
0x11bf   :  { %v938_v2 = vadd.f32 1.0, %v1349_v1 }
0x11c1   :  { %1350 = vrcp.f32 %v938_v2 }
0x11cb   :  { %v1351_v3 = vpop.eup %1350 }
0x11cc   :  { %v953_v20 = vsub.f32 1.0, %v1351_v3 }
0x1224   :  { %v944_v4 = vpop.permute.xlu1 %943 }
0x1225   :  { %v946_v5 = vmul.f32 %v1351_v3, %v944_v4 }
0x1227   :  { %948 = vrot.lane.b32.xlu0 %v946_v5, %s1534_s25 }
0x122b   :  { %960 = vrot.lane.b32.xlu0 %v884_v51, %s1543_s8 }
0x1299   :  { %v949_v7 = vpop.permute.xlu0 %948 }
0x129a   :  { %v951_v9 = vadd.f32 %v949_v7, %v1720_v14 }
0x129c   :  { %1352 = vtanh.f32 %v951_v9 }
0x129d   :  { %v961_v19 = vpop.permute.xlu0 %960 }
0x129e   :  { %v963_v22 = vmul.f32 %v1351_v3, %v961_v19 }
0x12a6   :  { %v1353_v12 = vpop.eup %1352 }
0x12a7   :  { %955 = vrot.lane.b32.xlu1 %v1353_v12, %s1542_s19 }
0x12ab   :  { %972 = vrot.lane.b32.xlu1 %v970_v18, %s1543_s8 }
0x1319   :  { %v956_v21 = vpop.permute.xlu1 %955 }
0x131a   :  { %v958_v24 = vmul.f32 %v956_v21, %v953_v20 }
0x131c   :  { %v964_v25 = vadd.f32 %v963_v22, %v958_v24 }
0x131d   :  { %v973_v27 = vpop.permute.xlu1 %972 }
0x131e   :  { %v968_v26 = vmul.f32 %v1162_v10, %v964_v25  ;;  %v195_v10 = vmul.f32 %v1760_v56, %v1760_v56 }
0x1320   :  { %v975_v28 = vadd.f32 %v973_v27, %v968_v26 }
0x1322   :  { %v977_v29 = vpack.c.bf16 %v975_v28, %v975_v28  ;;  %v1054_v46 = vrot.slane %v975_v28, 4 }
0x1324   :  { %979 = vrot.lane.b32.xlu0 %v977_v29, %s1542_s19 }
0x1396   :  { %v980_v6 = vpop.permute.xlu0 %979 }
0x1397   :  { %1280 = vmatmul.mubr.msk.bf16.vlgmr.msra.gmra.mrb[16].mxu0 %vm245_vm1, %v980_v6 }
0x146a   :  { %v1018_v23 = vpop.f32.mrb[16].mxu0 }
0x146b   :  { %v1034_v31 = vadd.f32 %v1018_v23, %v1724_v17  ;;  %v1281_v32 = vpop.f32.mrb[17].mxu0  ;;  %v1025_v35 = vrot.slane %v1018_v23, 4 }
0x146c   :  { %v1021_v33 = vpop.f32.mrb[18].mxu0 }
0x146d   :  { %v1282_v8 = vpop.f32.mrb[19].mxu0  ;;  %v1036_v34 = vrot.slane %v1034_v31, 4  ;;  %v1027_v36 = vadd.f32 %v1025_v35, %v1720_v14 }
0x146f   :  { %1037 = vrot.lane.b32.xlu1 %v1036_v34, %s1534_s25  ;;  %v1164_v37 = vmul.f32 -1.442695, %v1027_v36 }
0x1471   :  { %1354 = vpow2.f32 %v1164_v37 }
0x147b   :  { %v1355_v38 = vpop.eup %1354 }
0x147c   :  { %v1031_v16 = vadd.f32 1.0, %v1355_v38 }
0x147e   :  { %1356 = vrcp.f32 %v1031_v16 }
0x1488   :  { %v1357_v41 = vpop.eup %1356 }
0x1489   :  { %v1047_v47 = vsub.f32 1.0, %v1357_v41  ;;  %v1056_v50 = vmul.f32 %v1357_v41, %v1054_v46 }
0x14e1   :  { %v1038_v42 = vpop.permute.xlu1 %1037 }
0x14e2   :  { %v1040_v43 = vmul.f32 %v1357_v41, %v1038_v42 }
0x14e4   :  { %1042 = vrot.lane.b32.xlu0 %v1040_v43, %s1534_s25  ;;  %s1544_s25 = smov [#allocation11]  }
0x14e5   :  { %s1098_s21 = sshll.u32 %s1544_s25, 4  ;;  %s1099_s21 = int_to_ptr.vmem [resolvable:$true] %s1098_s21 }
0x14e6   :  { %s1478_s23 = scalar_lea.vmem %s1099_s21, 256  ;;  %p1483_p13 = scmp.lt.s32.totalorder %s1099_s21, %s1099_s21 }
0x14e7   :  { %p1479_p12 = scmp.ne.s32.totalorder %s1099_s21, %s1478_s23  ;;  %p1484_p0 = scmp.lt.s32.totalorder %s1478_s23, %s1478_s23 }
0x14e9   :  { %p1485_p1 = por %p1484_p0, %p1483_p13 }
0x14eb   :  { %p1486_p2 = pnand %p1485_p1, %p1479_p12 }
0x1556   :  { %v1043_v17 = vpop.permute.xlu0 %1042 }
0x1557   :  { %v1045_v44 = vadd.f32 %v1043_v17, %v1720_v14  ;;  %v1165_v14 = vsel %vm1058_vm10, 1.0, %v1539_v0 }
0x1559   :  { %1358 = vtanh.f32 %v1045_v44 }
0x155a   :  { %1360 = vrcp.f32 %v1072_v62 }
0x1563   :  { %v1359_v45 = vpop.eup %1358 }
0x1564   :  { %1049 = vrot.lane.b32.xlu1 %v1359_v45, %s1542_s19  ;;  %v1361_v5 = vpop.eup %1360 }
0x1568   :  { %508 = vrot.lane.b32.xlu1 %v1779_v30, %s1543_s8 }
0x156c   :  { %886 = vrot.lane.b32.xlu1 %v1859_v48, %s1543_s8 }
0x15d6   :  { %v1050_v11 = vpop.permute.xlu1 %1049 }
0x15d7   :  { %v1052_v51 = vmul.f32 %v1050_v11, %v1047_v47 }
0x15d9   :  { %v1057_v54 = vadd.f32 %v1056_v50, %v1052_v51 }
0x15da   :  { %v509_v48 = vpop.permute.xlu1 %508 }
0x15db   :  { %v1062_v55 = vrot.slane %v1057_v54, 4  ;;  %v511_v58 = vadd.f32 %v509_v48, %v1751_v49  ;;  %v188_v49 = vadd.f32 %v1755_v52, %v1757_v53 }
0x15dd   :  { %1063 = vrot.lane.b32.xlu0 %v1062_v55, %s1542_s19  ;;  %v598_v60 = vadd.f32 %v1799_v63, %v511_v58  ;;  %v194_v63 = vmul.f32 %v188_v49, %v188_v49 }
0x15e1   :  { %697 = vrot.lane.b32.xlu0 %v1820_v39, %s1543_s8  ;;  %v887_v39 = vpop.permute.xlu1 %886 }
0x164f   :  { %v1064_v30 = vpop.permute.xlu0 %1063 }
0x1650   :  { %v1066_v57 = vmul.f32 %v1165_v14, %v1064_v30 }
0x1652   :  { %1068 = vrot.lane.b32.xlu0 %v1066_v57, %s1543_s8 }
0x1653   :  { %v698_v59 = vpop.permute.xlu0 %697 }
0x1654   :  { %v700_v61 = vadd.f32 %v698_v59, %v598_v60 }
0x1656   :  { %v787_v1 = vadd.f32 %v1839_v13, %v700_v61 }
0x1658   :  { %v889_v2 = vadd.f32 %v887_v39, %v787_v1 }
0x165a   :  { %v976_v3 = vadd.f32 %v968_v26, %v889_v2 }
0x16c4   :  { %v1069_v0 = vpop.permute.xlu0 %1068 }
0x16c5   :  { %v1071_v4 = vadd.f32 %v1069_v0, %v976_v3 }
0x16c7   :  { %v1074_v7 = vmul.f32 %v1361_v5, %v1071_v4 }
0x16c9   :  { %v1075_v9 = vmul.f32 %v1074_v7, %v1074_v7 }
0x16cb   :  { %1077 = vrot.lane.b32.xlu1 %v1075_v9, %s1542_s19 }
0x16ef   :  { %196 = vadd.xlane.f32.xlu1 %v194_v63 }
0x173d   :  { %v1078_v40 = vpop.permute.xlu1 %1077 }
0x173e   :  { %v1081_v13 = vsel %vm1080_vm11, %v1078_v40, 0.0 }
0x173f   :  { %1082 = vadd.xlane.f32.xlu0 %v1081_v13 }
0x1743   :  { %198 = vadd.xlane.f32.xlu0 %v195_v10 }
0x177c   :  { %v197_v12 = vpop.xlane.xlu1 %196 }
0x177d   :  { %v200_v15 = vmax.f32 %v197_v12, 1e-24 }
0x177f   :  { %1362 = vrsqrt.f32 %v200_v15 }
0x1789   :  { %v1363_v18 = vpop.eup %1362 }
0x178a   :  { %v204_v19 = vmul.f32 %v1363_v18, %v188_v49 }
0x178c   :  { %206 = vst [vmem:[#allocation11] sm:$0xff] %v204_v19 }
0x17cc   :  { %v1083_v20 = vpop.xlane.xlu0 %1082 }
0x17cd   :  { %v1084_v21 = vmax.f32 %v1083_v20, 1e-24 }
0x17cf   :  { %1364 = vrsqrt.f32 %v1084_v21 }
0x17d0   :  { %v199_v52 = vpop.xlane.xlu0 %198 }
0x17d1   :  { %v201_v53 = vmax.f32 %v199_v52, 1e-24 }
0x17d3   :  { %1366 = vrsqrt.f32 %v201_v53 }
0x17d9   :  { %v1365_v22 = vpop.eup %1364 }
0x17da   :  { %v1086_v24 = vmul.f32 %v1365_v22, %v1074_v7 }
0x17dc   :  { %1089 = vrot.lane.b32.xlu0 %v1086_v24, %s1542_s19 }
0x17dd   :  { %v1367_v25 = vpop.eup %1366 }
0x17de   :  { %v205_v26 = vmul.f32 %v1367_v25, %v1760_v56 }
0x17e0   :  { %207 = vst [vmem:[#allocation11 + $0x8] sm:$0xff] %v205_v26 }
0x17e1   :  { %1489 = shalt.err (!%p1486_p2)
}
0x17e2   :  { %s1490_s24 = scalar_lea.hbm %s1937_s9, 256 }
0x17e3   :  { %p1491_p3 = scmp.ne.s32.totalorder %s1937_s9, %s1490_s24  ;;  %p1494_p4 = scmp.lt.u32.totalorder %s1490_s24, %s1937_s9 }
0x17e5   :  { %p1496_p5 = pnand %p1494_p4, %p1491_p3 }
0x17e7   :  { %1499 = shalt.err (!%p1496_p5)
}
0x17e8   :  { %s1545_s11 = smov 128   ;;  %s1546_s4 = smov 8  }
0x17e9   :  { %1104 = dma.vmem_to_hbm [thread:$0]  %s1099_s21, 256, %s1937_s9, [#allocation4], %s1545_s11, %s1545_s11, %s1546_s4  }
0x17ea   :  { %s1547_s13 = smov [#allocation12]  }
0x17eb   :  { %s1111_s2 = sshll.u32 %s1547_s13, 4  ;;  %s1112_s2 = int_to_ptr.vmem [resolvable:$true] %s1111_s2 }
0x17ec   :  { %s1500_s22 = scalar_lea.vmem %s1112_s2, 64  ;;  %p1505_p7 = scmp.lt.s32.totalorder %s1112_s2, %s1112_s2 }
0x17ed   :  { %p1501_p6 = scmp.ne.s32.totalorder %s1112_s2, %s1500_s22  ;;  %p1506_p8 = scmp.lt.s32.totalorder %s1500_s22, %s1500_s22 }
0x17ef   :  { %p1507_p9 = por %p1506_p8, %p1505_p7 }
0x17f1   :  { %p1508_p10 = pnand %p1507_p9, %p1501_p6 }
0x184e   :  { %v1090_v56 = vpop.permute.xlu0 %1089 }
0x184f   :  { %1092 = vst.msk [vmem:[#allocation12] sm:$0xf] %vm1080_vm11, %v1090_v56 }
0x1850   :  { %1511 = shalt.err (!%p1508_p10)
}
0x1851   :  { %s1512_s15 = scalar_lea.hbm %s1938_s10, 64 }
0x1852   :  { %p1513_p11 = scmp.ne.s32.totalorder %s1938_s10, %s1512_s15  ;;  %p1516_p12 = scmp.lt.u32.totalorder %s1512_s15, %s1938_s10 }
0x1854   :  { %p1518_p13 = pnand %p1516_p12, %p1513_p11 }
0x1856   :  { %1521 = shalt.err (!%p1518_p13)
}
0x1857   :  { %1114 = dma.vmem_to_hbm [thread:$0]  %s1112_s2, 64, %s1938_s10, [#allocation13]  }
0x1858   :  { %1528 = dma.done.wait [#allocation4], 256  }
0x1859   :  { %1529 = vsyncadd [#allocation4], 4294967040 }
0x185a   :  { %1530 = dma.done.wait [#allocation13], 64  }
0x185b   :  { %1531 = vsyncadd [#allocation13], 4294967232 }
0x185c   :  { %1121 = vsyncpa [#allocation3], 1 }
0x185d   :  { %1122 = vsyncpa [#allocation6], 1 }
0x185e   :  { %1123 = vsyncpa [#allocation9], 1 }
0x185f   :  { %1124 = vsyncpa [#allocation4], 1 }
0x1860   :  { %1125 = vsyncpa [#allocation13], 1 }

</bundles_post_ra>
